<compile_context>
chip_gen: v6e
topology: v6e:2x2x1
jax: 0.10.0
libtpu: 0.0.40
codegen_flags: <defaults>
</compile_context>

<pallas_src>
import numpy as np
import jax
import jax.numpy as jnp
from jax import lax
from jax.experimental import pallas as pl
from jax.experimental.pallas import tpu as pltpu


# ----------------------------------------------------------------------------
# Fused decoder kernel: GRU + attention + fc + softmax
# ----------------------------------------------------------------------------
def decoder_kernel(emb_ref, h0_ref, w_ih_ref, w_hh_ref, b_ih_ref, b_hh_ref,
                   yenc_ref, w1_ref, w2_ref, b_fc_ref,
                   out_ref, h_out_ref, y_scratch):
    # emb_ref  : (T*B, E)    time-major flattened embedded inputs (row = t*B + b)
    # h0_ref   : (B, H)      initial hidden state
    # w_ih_ref : (E, 3H)     input->hidden weights, gate order [r | z | n]
    # w_hh_ref : (H, 3H)     hidden->hidden weights, same gate order
    # b_ih_ref : (1, 3H)
    # b_hh_ref : (1, 3H)
    # yenc_ref : (B, S, H)   encoder outputs
    # w1_ref   : (H, O_pad)  fc weight for the "y" half     (zero-padded lanes)
    # w2_ref   : (H, O_pad)  fc weight for the "context" half (zero-padded lanes)
    # b_fc_ref : (1, 1, O_pad)  bias; padded lanes are -1e30 (killed by softmax)
    # out_ref  : (B, T, O_pad)
    # h_out_ref: (B, H)      final hidden state
    # y_scratch: (B, T, H)   VMEM scratch holding all GRU outputs
    B, H = h0_ref.shape
    T = y_scratch.shape[1]

    # ---- GRU: hoisted input projection (one matmul for all timesteps) ----
    gx_all = jnp.dot(emb_ref[...], w_ih_ref[...],
                     preferred_element_type=jnp.float32) + b_ih_ref[...]    # (T*B, 3H)

    w_hh = w_hh_ref[...]
    b_hh = b_hh_ref[...]
    h = h0_ref[...]                       # register-carried recurrent state
    for t in range(T):                    # static unroll (T small, known at trace time)
        gx = gx_all[t * B:(t + 1) * B, :]                                   # (B, 3H)
        gh = jnp.dot(h, w_hh, preferred_element_type=jnp.float32) + b_hh    # (B, 3H)
        r = jax.nn.sigmoid(gx[:, :H] + gh[:, :H])
        z = jax.nn.sigmoid(gx[:, H:2 * H] + gh[:, H:2 * H])
        n = jnp.tanh(gx[:, 2 * H:] + r * gh[:, 2 * H:])
        h = (1.0 - z) * n + z * h
        y_scratch[:, t, :] = h            # write in (B, T, H) layout directly
    h_out_ref[...] = h

    # ---- attention (lane-major softmax over S) + fc + output softmax ----
    y_dec = y_scratch[...]                # (B, T, H)
    yenc = yenc_ref[...]                  # (B, S, H)

    # scores as (B, T, S): softmax reduces over the last (lane) axis
    ed = jnp.einsum('bth,bsh->bts', y_dec, yenc,
                    preferred_element_type=jnp.float32)                     # (B, T, S)
    e = jnp.exp(ed - jnp.max(ed, axis=-1, keepdims=True))
    attn = e * pl.reciprocal(jnp.sum(e, axis=-1, keepdims=True), approx=True)

    ctx = jnp.einsum('bts,bsh->bth', attn, yenc,
                     preferred_element_type=jnp.float32)                    # (B, T, H)

    # fc on cat([y, context], dim=2): weight split so no lane-dim concat needed
    logits = (jnp.einsum('bth,ho->bto', y_dec, w1_ref[...],
                         preferred_element_type=jnp.float32)
              + jnp.einsum('bth,ho->bto', ctx, w2_ref[...],
                           preferred_element_type=jnp.float32)
              + b_fc_ref[...])                                              # (B, T, O_pad)

    # softmax over the (padded, lane-dense) output axis; padded lanes -> 0
    e2 = jnp.exp(logits - jnp.max(logits, axis=-1, keepdims=True))
    out_ref[...] = e2 * pl.reciprocal(jnp.sum(e2, axis=-1, keepdims=True),
                                      approx=True)


# ----------------------------------------------------------------------------
# Full decoder forward (glue in plain JAX)
# ----------------------------------------------------------------------------
def decoder_forward(params, x, h_encoder, y_encoder):
    B, T = x.shape
    E = params['emb_table'].shape[-1]
    H = params['w_hh'].shape[-1]
    n_out = params['b_fc'].shape[-1]
    n_pad = ((n_out + 127) // 128) * 128
    pad = n_pad - n_out

    # embedding lookup (gather) + dropout (p=0.0 -> identity); time-major flatten
    emb = jnp.take(params['emb_table'], jnp.transpose(x), axis=0)   # (T, B, E)
    emb_flat = emb.reshape(T * B, E)

    # concat GRU gate weights/biases once (gate order r|z|n)
    w_ih_cat = jnp.concatenate(
        [params['w_ih'][0], params['w_ih'][1], params['w_ih'][2]], axis=-1)  # (E, 3H)
    w_hh_cat = jnp.concatenate(
        [params['w_hh'][0], params['w_hh'][1], params['w_hh'][2]], axis=-1)  # (H, 3H)
    b_ih_cat = params['b_ih'].reshape(1, 3 * H)
    b_hh_cat = params['b_hh'].reshape(1, 3 * H)

    # lane-dense fc output: zero-pad weights to a 128-multiple width; padded
    # bias lanes get -1e30 so they vanish under softmax; sliced back below.
    w1_pad = jnp.pad(params['w_fc1'], ((0, 0), (0, pad)))
    w2_pad = jnp.pad(params['w_fc2'], ((0, 0), (0, pad)))
    b_pad = jnp.pad(params['b_fc'], ((0, 0), (0, 0), (0, pad)),
                    constant_values=-1e30)

    vmem = pl.BlockSpec(memory_space=pltpu.MemorySpace.VMEM)
    out_pad, h_last = pl.pallas_call(
        decoder_kernel,
        out_shape=(jax.ShapeDtypeStruct((B, T, n_pad), jnp.float32),
                   jax.ShapeDtypeStruct((B, H), jnp.float32)),
        in_specs=[vmem] * 10,
        out_specs=(vmem, vmem),
        scratch_shapes=[pltpu.VMEM((B, T, H), jnp.float32)],
    )(emb_flat, h_encoder[0], w_ih_cat, w_hh_cat, b_ih_cat, b_hh_cat,
      y_encoder, w1_pad, w2_pad, b_pad)

    return out_pad[:, :, :n_out], h_last[None]                     # (B,T,n_out), (1,B,H)


# ----------------------------------------------------------------------------
# Pure-JAX reference (for correctness validation)
# ----------------------------------------------------------------------------
def ref_decoder(params, x, h_encoder, y_encoder):
    emb = jnp.take(params['emb_table'], x, axis=0)                  # (B, T, E)
    w_ih, w_hh = params['w_ih'], params['w_hh']
    b_ih, b_hh = params['b_ih'], params['b_hh']

    def step(h, x_t):
        gx_r = x_t @ w_ih[0] + b_ih[0]
        gx_z = x_t @ w_ih[1] + b_ih[1]
        gx_n = x_t @ w_ih[2] + b_ih[2]
        gh_r = h @ w_hh[0] + b_hh[0]
        gh_z = h @ w_hh[1] + b_hh[1]
        gh_n = h @ w_hh[2] + b_hh[2]
        r = jax.nn.sigmoid(gx_r + gh_r)
        z = jax.nn.sigmoid(gx_z + gh_z)
        n = jnp.tanh(gx_n + r * gh_n)
        h_new = (1.0 - z) * n + z * h
        return h_new, h_new

    h_last, y_t = lax.scan(step, h_encoder[0], jnp.transpose(emb, (1, 0, 2)))
    y_dec = jnp.transpose(y_t, (1, 0, 2))                           # (B, T, H)

    ed = jnp.einsum('bsh,bth->bst', y_encoder, y_dec)
    attn = jax.nn.softmax(ed, axis=1)
    ctx = jnp.einsum('bst,bsh->bth', attn, y_encoder)
    cat = jnp.concatenate([y_dec, ctx], axis=2)
    w_full = jnp.concatenate([params['w_fc1'], params['w_fc2']], axis=0)  # (2H, n_out)
    logits = cat @ w_full + params['b_fc'][0]
    return jax.nn.softmax(logits, axis=2), h_last[None]


# ----------------------------------------------------------------------------
if __name__ == "__main__":
    # sizes implied by the module
    B, T_dec, S_enc = 2, 8, 10
    n_vocab, n_emb, n_h, n_out = 50, 16, 32, 20

    key = jax.random.PRNGKey(0)
    keys = jax.random.split(key, 10)

    k_gru = 1.0 / np.sqrt(n_h)
    k_fc = 1.0 / np.sqrt(2 * n_h)
    params = {
        'emb_table': jax.random.normal(keys[0], (n_vocab, n_emb), jnp.float32),
        'w_ih': jax.random.uniform(keys[1], (3, n_emb, n_h), jnp.float32, -k_gru, k_gru),
        'w_hh': jax.random.uniform(keys[2], (3, n_h, n_h), jnp.float32, -k_gru, k_gru),
        'b_ih': jax.random.uniform(keys[3], (3, 1, n_h), jnp.float32, -k_gru, k_gru),
        'b_hh': jax.random.uniform(keys[4], (3, 1, n_h), jnp.float32, -k_gru, k_gru),
    }
    fc_weight = jax.random.uniform(keys[5], (n_out, 2 * n_h), jnp.float32, -k_fc, k_fc)
    fc_bias = jax.random.uniform(keys[6], (n_out,), jnp.float32, -k_fc, k_fc)
    params['w_fc1'] = fc_weight[:, :n_h].T            # (H, n_out)
    params['w_fc2'] = fc_weight[:, n_h:].T            # (H, n_out)
    params['b_fc'] = fc_bias.reshape(1, 1, n_out)

    # inputs
    x = jax.random.randint(keys[7], (B, T_dec), 0, n_vocab, dtype=jnp.int32)
    h_encoder = jax.random.normal(keys[8], (1, B, n_h), jnp.float32)
    y_encoder = jax.random.normal(keys[9], (B, S_enc, n_h), jnp.float32)

    y_out, h_out = jax.jit(decoder_forward)(params, x, h_encoder, y_encoder)
    jax.block_until_ready((y_out, h_out))

    # correctness check against pure-JAX reference
    y_ref, h_ref = jax.jit(ref_decoder)(params, x, h_encoder, y_encoder)
    np.testing.assert_allclose(np.asarray(y_out), np.asarray(y_ref), rtol=1e-2, atol=2e-3)
    np.testing.assert_allclose(np.asarray(h_out), np.asarray(h_ref), rtol=1e-2, atol=2e-3)

    assert y_out.shape == (B, T_dec, n_out)
    assert h_out.shape == (1, B, n_h)
    print("KERNEL_OK")
</pallas_src>

<mosaic_0001>
module attributes {stable_mosaic.version = 11 : i64} {
  func.func @decoder_kernel(%arg0: memref<16x16xf32, #tpu.memory_space<vmem>>, %arg1: memref<2x32xf32, #tpu.memory_space<vmem>>, %arg2: memref<16x96xf32, #tpu.memory_space<vmem>>, %arg3: memref<32x96xf32, #tpu.memory_space<vmem>>, %arg4: memref<1x96xf32, #tpu.memory_space<vmem>>, %arg5: memref<1x96xf32, #tpu.memory_space<vmem>>, %arg6: memref<2x10x32xf32, #tpu.memory_space<vmem>>, %arg7: memref<32x128xf32, #tpu.memory_space<vmem>>, %arg8: memref<32x128xf32, #tpu.memory_space<vmem>>, %arg9: memref<1x1x128xf32, #tpu.memory_space<vmem>>, %arg10: memref<2x8x128xf32, #tpu.memory_space<vmem>>, %arg11: memref<2x32xf32, #tpu.memory_space<vmem>>, %arg12: memref<2x8x32xf32, #tpu.memory_space<vmem>>) attributes {dimension_semantics = [], scalar_prefetch = 0 : i64, scratch_operands = 1 : i64, tpu.core_type = #tpu.core_type<tc>} {
    %c0 = arith.constant 0 : index
    %c0_0 = arith.constant 0 : index
    %0 = vector.load %arg0[%c0, %c0_0] : memref<16x16xf32, #tpu.memory_space<vmem>>, vector<16x16xf32>
    %c0_1 = arith.constant 0 : index
    %c0_2 = arith.constant 0 : index
    %1 = vector.load %arg2[%c0_1, %c0_2] : memref<16x96xf32, #tpu.memory_space<vmem>>, vector<16x96xf32>
    %cst = arith.constant dense<0.000000e+00> : vector<16x96xf32>
    %2 = tpu.matmul %0, %1, %cst {dimension_numbers = #tpu.dot_dimension_numbers<[1], [0], [0], [1], [0, 0, 1, 1], [], []>} : vector<16x16xf32>, vector<16x96xf32>, vector<16x96xf32> -> vector<16x96xf32>
    %c0_3 = arith.constant 0 : index
    %c0_4 = arith.constant 0 : index
    %3 = vector.load %arg4[%c0_3, %c0_4] : memref<1x96xf32, #tpu.memory_space<vmem>>, vector<1x96xf32>
    %4 = vector.broadcast %3 : vector<1x96xf32> to vector<16x96xf32>
    %5 = arith.addf %2, %4 : vector<16x96xf32>
    %c0_5 = arith.constant 0 : index
    %c0_6 = arith.constant 0 : index
    %6 = vector.load %arg3[%c0_5, %c0_6] : memref<32x96xf32, #tpu.memory_space<vmem>>, vector<32x96xf32>
    %c0_7 = arith.constant 0 : index
    %c0_8 = arith.constant 0 : index
    %7 = vector.load %arg5[%c0_7, %c0_8] : memref<1x96xf32, #tpu.memory_space<vmem>>, vector<1x96xf32>
    %c0_9 = arith.constant 0 : index
    %c0_10 = arith.constant 0 : index
    %8 = vector.load %arg1[%c0_9, %c0_10] : memref<2x32xf32, #tpu.memory_space<vmem>>, vector<2x32xf32>
    %9 = vector.extract_strided_slice %5 {offsets = [0, 0], sizes = [2, 96], strides = [1, 1]} : vector<16x96xf32> to vector<2x96xf32>
    %cst_11 = arith.constant dense<0.000000e+00> : vector<2x96xf32>
    %10 = tpu.matmul %8, %6, %cst_11 {dimension_numbers = #tpu.dot_dimension_numbers<[1], [0], [0], [1], [0, 0, 1, 1], [], []>} : vector<2x32xf32>, vector<32x96xf32>, vector<2x96xf32> -> vector<2x96xf32>
    %11 = vector.broadcast %7 : vector<1x96xf32> to vector<2x96xf32>
    %12 = arith.addf %10, %11 : vector<2x96xf32>
    %13 = vector.extract_strided_slice %9 {offsets = [0, 0], sizes = [2, 32], strides = [1, 1]} : vector<2x96xf32> to vector<2x32xf32>
    %14 = vector.extract_strided_slice %12 {offsets = [0, 0], sizes = [2, 32], strides = [1, 1]} : vector<2x96xf32> to vector<2x32xf32>
    %15 = arith.addf %13, %14 : vector<2x32xf32>
    %16 = arith.negf %15 : vector<2x32xf32>
    %17 = math.exp %16 : vector<2x32xf32>
    %cst_12 = arith.constant 1.000000e+00 : f32
    %18 = vector.broadcast %cst_12 : f32 to vector<2x32xf32>
    %19 = arith.addf %18, %17 : vector<2x32xf32>
    %20 = arith.divf %18, %19 : vector<2x32xf32>
    %21 = vector.extract_strided_slice %9 {offsets = [0, 32], sizes = [2, 32], strides = [1, 1]} : vector<2x96xf32> to vector<2x32xf32>
    %22 = vector.extract_strided_slice %12 {offsets = [0, 32], sizes = [2, 32], strides = [1, 1]} : vector<2x96xf32> to vector<2x32xf32>
    %23 = arith.addf %21, %22 : vector<2x32xf32>
    %24 = arith.negf %23 : vector<2x32xf32>
    %25 = math.exp %24 : vector<2x32xf32>
    %cst_13 = arith.constant 1.000000e+00 : f32
    %26 = vector.broadcast %cst_13 : f32 to vector<2x32xf32>
    %27 = arith.addf %26, %25 : vector<2x32xf32>
    %28 = arith.divf %26, %27 : vector<2x32xf32>
    %29 = vector.extract_strided_slice %9 {offsets = [0, 64], sizes = [2, 32], strides = [1, 1]} : vector<2x96xf32> to vector<2x32xf32>
    %30 = vector.extract_strided_slice %12 {offsets = [0, 64], sizes = [2, 32], strides = [1, 1]} : vector<2x96xf32> to vector<2x32xf32>
    %31 = arith.mulf %20, %30 : vector<2x32xf32>
    %32 = arith.addf %29, %31 : vector<2x32xf32>
    %33 = math.tanh %32 : vector<2x32xf32>
    %cst_14 = arith.constant 1.000000e+00 : f32
    %34 = vector.broadcast %cst_14 : f32 to vector<2x32xf32>
    %35 = arith.subf %34, %28 : vector<2x32xf32>
    %36 = arith.mulf %35, %33 : vector<2x32xf32>
    %37 = arith.mulf %28, %8 : vector<2x32xf32>
    %38 = arith.addf %36, %37 : vector<2x32xf32>
    %c0_15 = arith.constant 0 : index
    %c0_16 = arith.constant 0 : index
    %c0_17 = arith.constant 0 : index
    %39 = vector.load %arg12[%c0_15, %c0_16, %c0_17] : memref<2x8x32xf32, #tpu.memory_space<vmem>>, vector<2x1x32xf32>
    %40 = vector.shape_cast %39 : vector<2x1x32xf32> to vector<2x32xf32>
    %41 = vector.shape_cast %38 : vector<2x32xf32> to vector<2x1x32xf32>
    tpu.vector_store %arg12[%c0_15, %c0_16, %c0_17], %41 {strides = array<i32>} : memref<2x8x32xf32, #tpu.memory_space<vmem>>, vector<2x1x32xf32>,
    %42 = vector.extract_strided_slice %5 {offsets = [2, 0], sizes = [2, 96], strides = [1, 1]} : vector<16x96xf32> to vector<2x96xf32>
    %cst_18 = arith.constant dense<0.000000e+00> : vector<2x96xf32>
    %43 = tpu.matmul %38, %6, %cst_18 {dimension_numbers = #tpu.dot_dimension_numbers<[1], [0], [0], [1], [0, 0, 1, 1], [], []>} : vector<2x32xf32>, vector<32x96xf32>, vector<2x96xf32> -> vector<2x96xf32>
    %44 = vector.broadcast %7 : vector<1x96xf32> to vector<2x96xf32>
    %45 = arith.addf %43, %44 : vector<2x96xf32>
    %46 = vector.extract_strided_slice %42 {offsets = [0, 0], sizes = [2, 32], strides = [1, 1]} : vector<2x96xf32> to vector<2x32xf32>
    %47 = vector.extract_strided_slice %45 {offsets = [0, 0], sizes = [2, 32], strides = [1, 1]} : vector<2x96xf32> to vector<2x32xf32>
    %48 = arith.addf %46, %47 : vector<2x32xf32>
    %49 = arith.negf %48 : vector<2x32xf32>
    %50 = math.exp %49 : vector<2x32xf32>
    %cst_19 = arith.constant 1.000000e+00 : f32
    %51 = vector.broadcast %cst_19 : f32 to vector<2x32xf32>
    %52 = arith.addf %51, %50 : vector<2x32xf32>
    %53 = arith.divf %51, %52 : vector<2x32xf32>
    %54 = vector.extract_strided_slice %42 {offsets = [0, 32], sizes = [2, 32], strides = [1, 1]} : vector<2x96xf32> to vector<2x32xf32>
    %55 = vector.extract_strided_slice %45 {offsets = [0, 32], sizes = [2, 32], strides = [1, 1]} : vector<2x96xf32> to vector<2x32xf32>
    %56 = arith.addf %54, %55 : vector<2x32xf32>
    %57 = arith.negf %56 : vector<2x32xf32>
    %58 = math.exp %57 : vector<2x32xf32>
    %cst_20 = arith.constant 1.000000e+00 : f32
    %59 = vector.broadcast %cst_20 : f32 to vector<2x32xf32>
    %60 = arith.addf %59, %58 : vector<2x32xf32>
    %61 = arith.divf %59, %60 : vector<2x32xf32>
    %62 = vector.extract_strided_slice %42 {offsets = [0, 64], sizes = [2, 32], strides = [1, 1]} : vector<2x96xf32> to vector<2x32xf32>
    %63 = vector.extract_strided_slice %45 {offsets = [0, 64], sizes = [2, 32], strides = [1, 1]} : vector<2x96xf32> to vector<2x32xf32>
    %64 = arith.mulf %53, %63 : vector<2x32xf32>
    %65 = arith.addf %62, %64 : vector<2x32xf32>
    %66 = math.tanh %65 : vector<2x32xf32>
    %cst_21 = arith.constant 1.000000e+00 : f32
    %67 = vector.broadcast %cst_21 : f32 to vector<2x32xf32>
    %68 = arith.subf %67, %61 : vector<2x32xf32>
    %69 = arith.mulf %68, %66 : vector<2x32xf32>
    %70 = arith.mulf %61, %38 : vector<2x32xf32>
    %71 = arith.addf %69, %70 : vector<2x32xf32>
    %c0_22 = arith.constant 0 : index
    %c1 = arith.constant 1 : index
    %c0_23 = arith.constant 0 : index
    %72 = vector.load %arg12[%c0_22, %c1, %c0_23] : memref<2x8x32xf32, #tpu.memory_space<vmem>>, vector<2x1x32xf32>
    %73 = vector.shape_cast %72 : vector<2x1x32xf32> to vector<2x32xf32>
    %74 = vector.shape_cast %71 : vector<2x32xf32> to vector<2x1x32xf32>
    tpu.vector_store %arg12[%c0_22, %c1, %c0_23], %74 {strides = array<i32>} : memref<2x8x32xf32, #tpu.memory_space<vmem>>, vector<2x1x32xf32>,
    %75 = vector.extract_strided_slice %5 {offsets = [4, 0], sizes = [2, 96], strides = [1, 1]} : vector<16x96xf32> to vector<2x96xf32>
    %cst_24 = arith.constant dense<0.000000e+00> : vector<2x96xf32>
    %76 = tpu.matmul %71, %6, %cst_24 {dimension_numbers = #tpu.dot_dimension_numbers<[1], [0], [0], [1], [0, 0, 1, 1], [], []>} : vector<2x32xf32>, vector<32x96xf32>, vector<2x96xf32> -> vector<2x96xf32>
    %77 = vector.broadcast %7 : vector<1x96xf32> to vector<2x96xf32>
    %78 = arith.addf %76, %77 : vector<2x96xf32>
    %79 = vector.extract_strided_slice %75 {offsets = [0, 0], sizes = [2, 32], strides = [1, 1]} : vector<2x96xf32> to vector<2x32xf32>
    %80 = vector.extract_strided_slice %78 {offsets = [0, 0], sizes = [2, 32], strides = [1, 1]} : vector<2x96xf32> to vector<2x32xf32>
    %81 = arith.addf %79, %80 : vector<2x32xf32>
    %82 = arith.negf %81 : vector<2x32xf32>
    %83 = math.exp %82 : vector<2x32xf32>
    %cst_25 = arith.constant 1.000000e+00 : f32
    %84 = vector.broadcast %cst_25 : f32 to vector<2x32xf32>
    %85 = arith.addf %84, %83 : vector<2x32xf32>
    %86 = arith.divf %84, %85 : vector<2x32xf32>
    %87 = vector.extract_strided_slice %75 {offsets = [0, 32], sizes = [2, 32], strides = [1, 1]} : vector<2x96xf32> to vector<2x32xf32>
    %88 = vector.extract_strided_slice %78 {offsets = [0, 32], sizes = [2, 32], strides = [1, 1]} : vector<2x96xf32> to vector<2x32xf32>
    %89 = arith.addf %87, %88 : vector<2x32xf32>
    %90 = arith.negf %89 : vector<2x32xf32>
    %91 = math.exp %90 : vector<2x32xf32>
    %cst_26 = arith.constant 1.000000e+00 : f32
    %92 = vector.broadcast %cst_26 : f32 to vector<2x32xf32>
    %93 = arith.addf %92, %91 : vector<2x32xf32>
    %94 = arith.divf %92, %93 : vector<2x32xf32>
    %95 = vector.extract_strided_slice %75 {offsets = [0, 64], sizes = [2, 32], strides = [1, 1]} : vector<2x96xf32> to vector<2x32xf32>
    %96 = vector.extract_strided_slice %78 {offsets = [0, 64], sizes = [2, 32], strides = [1, 1]} : vector<2x96xf32> to vector<2x32xf32>
    %97 = arith.mulf %86, %96 : vector<2x32xf32>
    %98 = arith.addf %95, %97 : vector<2x32xf32>
    %99 = math.tanh %98 : vector<2x32xf32>
    %cst_27 = arith.constant 1.000000e+00 : f32
    %100 = vector.broadcast %cst_27 : f32 to vector<2x32xf32>
    %101 = arith.subf %100, %94 : vector<2x32xf32>
    %102 = arith.mulf %101, %99 : vector<2x32xf32>
    %103 = arith.mulf %94, %71 : vector<2x32xf32>
    %104 = arith.addf %102, %103 : vector<2x32xf32>
    %c0_28 = arith.constant 0 : index
    %c2 = arith.constant 2 : index
    %c0_29 = arith.constant 0 : index
    %105 = vector.load %arg12[%c0_28, %c2, %c0_29] : memref<2x8x32xf32, #tpu.memory_space<vmem>>, vector<2x1x32xf32>
    %106 = vector.shape_cast %105 : vector<2x1x32xf32> to vector<2x32xf32>
    %107 = vector.shape_cast %104 : vector<2x32xf32> to vector<2x1x32xf32>
    tpu.vector_store %arg12[%c0_28, %c2, %c0_29], %107 {strides = array<i32>} : memref<2x8x32xf32, #tpu.memory_space<vmem>>, vector<2x1x32xf32>,
    %108 = vector.extract_strided_slice %5 {offsets = [6, 0], sizes = [2, 96], strides = [1, 1]} : vector<16x96xf32> to vector<2x96xf32>
    %cst_30 = arith.constant dense<0.000000e+00> : vector<2x96xf32>
    %109 = tpu.matmul %104, %6, %cst_30 {dimension_numbers = #tpu.dot_dimension_numbers<[1], [0], [0], [1], [0, 0, 1, 1], [], []>} : vector<2x32xf32>, vector<32x96xf32>, vector<2x96xf32> -> vector<2x96xf32>
    %110 = vector.broadcast %7 : vector<1x96xf32> to vector<2x96xf32>
    %111 = arith.addf %109, %110 : vector<2x96xf32>
    %112 = vector.extract_strided_slice %108 {offsets = [0, 0], sizes = [2, 32], strides = [1, 1]} : vector<2x96xf32> to vector<2x32xf32>
    %113 = vector.extract_strided_slice %111 {offsets = [0, 0], sizes = [2, 32], strides = [1, 1]} : vector<2x96xf32> to vector<2x32xf32>
    %114 = arith.addf %112, %113 : vector<2x32xf32>
    %115 = arith.negf %114 : vector<2x32xf32>
    %116 = math.exp %115 : vector<2x32xf32>
    %cst_31 = arith.constant 1.000000e+00 : f32
    %117 = vector.broadcast %cst_31 : f32 to vector<2x32xf32>
    %118 = arith.addf %117, %116 : vector<2x32xf32>
    %119 = arith.divf %117, %118 : vector<2x32xf32>
    %120 = vector.extract_strided_slice %108 {offsets = [0, 32], sizes = [2, 32], strides = [1, 1]} : vector<2x96xf32> to vector<2x32xf32>
    %121 = vector.extract_strided_slice %111 {offsets = [0, 32], sizes = [2, 32], strides = [1, 1]} : vector<2x96xf32> to vector<2x32xf32>
    %122 = arith.addf %120, %121 : vector<2x32xf32>
    %123 = arith.negf %122 : vector<2x32xf32>
    %124 = math.exp %123 : vector<2x32xf32>
    %cst_32 = arith.constant 1.000000e+00 : f32
    %125 = vector.broadcast %cst_32 : f32 to vector<2x32xf32>
    %126 = arith.addf %125, %124 : vector<2x32xf32>
    %127 = arith.divf %125, %126 : vector<2x32xf32>
    %128 = vector.extract_strided_slice %108 {offsets = [0, 64], sizes = [2, 32], strides = [1, 1]} : vector<2x96xf32> to vector<2x32xf32>
    %129 = vector.extract_strided_slice %111 {offsets = [0, 64], sizes = [2, 32], strides = [1, 1]} : vector<2x96xf32> to vector<2x32xf32>
    %130 = arith.mulf %119, %129 : vector<2x32xf32>
    %131 = arith.addf %128, %130 : vector<2x32xf32>
    %132 = math.tanh %131 : vector<2x32xf32>
    %cst_33 = arith.constant 1.000000e+00 : f32
    %133 = vector.broadcast %cst_33 : f32 to vector<2x32xf32>
    %134 = arith.subf %133, %127 : vector<2x32xf32>
    %135 = arith.mulf %134, %132 : vector<2x32xf32>
    %136 = arith.mulf %127, %104 : vector<2x32xf32>
    %137 = arith.addf %135, %136 : vector<2x32xf32>
    %c0_34 = arith.constant 0 : index
    %c3 = arith.constant 3 : index
    %c0_35 = arith.constant 0 : index
    %138 = vector.load %arg12[%c0_34, %c3, %c0_35] : memref<2x8x32xf32, #tpu.memory_space<vmem>>, vector<2x1x32xf32>
    %139 = vector.shape_cast %138 : vector<2x1x32xf32> to vector<2x32xf32>
    %140 = vector.shape_cast %137 : vector<2x32xf32> to vector<2x1x32xf32>
    tpu.vector_store %arg12[%c0_34, %c3, %c0_35], %140 {strides = array<i32>} : memref<2x8x32xf32, #tpu.memory_space<vmem>>, vector<2x1x32xf32>,
    %141 = vector.extract_strided_slice %5 {offsets = [8, 0], sizes = [2, 96], strides = [1, 1]} : vector<16x96xf32> to vector<2x96xf32>
    %cst_36 = arith.constant dense<0.000000e+00> : vector<2x96xf32>
    %142 = tpu.matmul %137, %6, %cst_36 {dimension_numbers = #tpu.dot_dimension_numbers<[1], [0], [0], [1], [0, 0, 1, 1], [], []>} : vector<2x32xf32>, vector<32x96xf32>, vector<2x96xf32> -> vector<2x96xf32>
    %143 = vector.broadcast %7 : vector<1x96xf32> to vector<2x96xf32>
    %144 = arith.addf %142, %143 : vector<2x96xf32>
    %145 = vector.extract_strided_slice %141 {offsets = [0, 0], sizes = [2, 32], strides = [1, 1]} : vector<2x96xf32> to vector<2x32xf32>
    %146 = vector.extract_strided_slice %144 {offsets = [0, 0], sizes = [2, 32], strides = [1, 1]} : vector<2x96xf32> to vector<2x32xf32>
    %147 = arith.addf %145, %146 : vector<2x32xf32>
    %148 = arith.negf %147 : vector<2x32xf32>
    %149 = math.exp %148 : vector<2x32xf32>
    %cst_37 = arith.constant 1.000000e+00 : f32
    %150 = vector.broadcast %cst_37 : f32 to vector<2x32xf32>
    %151 = arith.addf %150, %149 : vector<2x32xf32>
    %152 = arith.divf %150, %151 : vector<2x32xf32>
    %153 = vector.extract_strided_slice %141 {offsets = [0, 32], sizes = [2, 32], strides = [1, 1]} : vector<2x96xf32> to vector<2x32xf32>
    %154 = vector.extract_strided_slice %144 {offsets = [0, 32], sizes = [2, 32], strides = [1, 1]} : vector<2x96xf32> to vector<2x32xf32>
    %155 = arith.addf %153, %154 : vector<2x32xf32>
    %156 = arith.negf %155 : vector<2x32xf32>
    %157 = math.exp %156 : vector<2x32xf32>
    %cst_38 = arith.constant 1.000000e+00 : f32
    %158 = vector.broadcast %cst_38 : f32 to vector<2x32xf32>
    %159 = arith.addf %158, %157 : vector<2x32xf32>
    %160 = arith.divf %158, %159 : vector<2x32xf32>
    %161 = vector.extract_strided_slice %141 {offsets = [0, 64], sizes = [2, 32], strides = [1, 1]} : vector<2x96xf32> to vector<2x32xf32>
    %162 = vector.extract_strided_slice %144 {offsets = [0, 64], sizes = [2, 32], strides = [1, 1]} : vector<2x96xf32> to vector<2x32xf32>
    %163 = arith.mulf %152, %162 : vector<2x32xf32>
    %164 = arith.addf %161, %163 : vector<2x32xf32>
    %165 = math.tanh %164 : vector<2x32xf32>
    %cst_39 = arith.constant 1.000000e+00 : f32
    %166 = vector.broadcast %cst_39 : f32 to vector<2x32xf32>
    %167 = arith.subf %166, %160 : vector<2x32xf32>
    %168 = arith.mulf %167, %165 : vector<2x32xf32>
    %169 = arith.mulf %160, %137 : vector<2x32xf32>
    %170 = arith.addf %168, %169 : vector<2x32xf32>
    %c0_40 = arith.constant 0 : index
    %c4 = arith.constant 4 : index
    %c0_41 = arith.constant 0 : index
    %171 = vector.load %arg12[%c0_40, %c4, %c0_41] : memref<2x8x32xf32, #tpu.memory_space<vmem>>, vector<2x1x32xf32>
    %172 = vector.shape_cast %171 : vector<2x1x32xf32> to vector<2x32xf32>
    %173 = vector.shape_cast %170 : vector<2x32xf32> to vector<2x1x32xf32>
    tpu.vector_store %arg12[%c0_40, %c4, %c0_41], %173 {strides = array<i32>} : memref<2x8x32xf32, #tpu.memory_space<vmem>>, vector<2x1x32xf32>,
    %174 = vector.extract_strided_slice %5 {offsets = [10, 0], sizes = [2, 96], strides = [1, 1]} : vector<16x96xf32> to vector<2x96xf32>
    %cst_42 = arith.constant dense<0.000000e+00> : vector<2x96xf32>
    %175 = tpu.matmul %170, %6, %cst_42 {dimension_numbers = #tpu.dot_dimension_numbers<[1], [0], [0], [1], [0, 0, 1, 1], [], []>} : vector<2x32xf32>, vector<32x96xf32>, vector<2x96xf32> -> vector<2x96xf32>
    %176 = vector.broadcast %7 : vector<1x96xf32> to vector<2x96xf32>
    %177 = arith.addf %175, %176 : vector<2x96xf32>
    %178 = vector.extract_strided_slice %174 {offsets = [0, 0], sizes = [2, 32], strides = [1, 1]} : vector<2x96xf32> to vector<2x32xf32>
    %179 = vector.extract_strided_slice %177 {offsets = [0, 0], sizes = [2, 32], strides = [1, 1]} : vector<2x96xf32> to vector<2x32xf32>
    %180 = arith.addf %178, %179 : vector<2x32xf32>
    %181 = arith.negf %180 : vector<2x32xf32>
    %182 = math.exp %181 : vector<2x32xf32>
    %cst_43 = arith.constant 1.000000e+00 : f32
    %183 = vector.broadcast %cst_43 : f32 to vector<2x32xf32>
    %184 = arith.addf %183, %182 : vector<2x32xf32>
    %185 = arith.divf %183, %184 : vector<2x32xf32>
    %186 = vector.extract_strided_slice %174 {offsets = [0, 32], sizes = [2, 32], strides = [1, 1]} : vector<2x96xf32> to vector<2x32xf32>
    %187 = vector.extract_strided_slice %177 {offsets = [0, 32], sizes = [2, 32], strides = [1, 1]} : vector<2x96xf32> to vector<2x32xf32>
    %188 = arith.addf %186, %187 : vector<2x32xf32>
    %189 = arith.negf %188 : vector<2x32xf32>
    %190 = math.exp %189 : vector<2x32xf32>
    %cst_44 = arith.constant 1.000000e+00 : f32
    %191 = vector.broadcast %cst_44 : f32 to vector<2x32xf32>
    %192 = arith.addf %191, %190 : vector<2x32xf32>
    %193 = arith.divf %191, %192 : vector<2x32xf32>
    %194 = vector.extract_strided_slice %174 {offsets = [0, 64], sizes = [2, 32], strides = [1, 1]} : vector<2x96xf32> to vector<2x32xf32>
    %195 = vector.extract_strided_slice %177 {offsets = [0, 64], sizes = [2, 32], strides = [1, 1]} : vector<2x96xf32> to vector<2x32xf32>
    %196 = arith.mulf %185, %195 : vector<2x32xf32>
    %197 = arith.addf %194, %196 : vector<2x32xf32>
    %198 = math.tanh %197 : vector<2x32xf32>
    %cst_45 = arith.constant 1.000000e+00 : f32
    %199 = vector.broadcast %cst_45 : f32 to vector<2x32xf32>
    %200 = arith.subf %199, %193 : vector<2x32xf32>
    %201 = arith.mulf %200, %198 : vector<2x32xf32>
    %202 = arith.mulf %193, %170 : vector<2x32xf32>
    %203 = arith.addf %201, %202 : vector<2x32xf32>
    %c0_46 = arith.constant 0 : index
    %c5 = arith.constant 5 : index
    %c0_47 = arith.constant 0 : index
    %204 = vector.load %arg12[%c0_46, %c5, %c0_47] : memref<2x8x32xf32, #tpu.memory_space<vmem>>, vector<2x1x32xf32>
    %205 = vector.shape_cast %204 : vector<2x1x32xf32> to vector<2x32xf32>
    %206 = vector.shape_cast %203 : vector<2x32xf32> to vector<2x1x32xf32>
    tpu.vector_store %arg12[%c0_46, %c5, %c0_47], %206 {strides = array<i32>} : memref<2x8x32xf32, #tpu.memory_space<vmem>>, vector<2x1x32xf32>,
    %207 = vector.extract_strided_slice %5 {offsets = [12, 0], sizes = [2, 96], strides = [1, 1]} : vector<16x96xf32> to vector<2x96xf32>
    %cst_48 = arith.constant dense<0.000000e+00> : vector<2x96xf32>
    %208 = tpu.matmul %203, %6, %cst_48 {dimension_numbers = #tpu.dot_dimension_numbers<[1], [0], [0], [1], [0, 0, 1, 1], [], []>} : vector<2x32xf32>, vector<32x96xf32>, vector<2x96xf32> -> vector<2x96xf32>
    %209 = vector.broadcast %7 : vector<1x96xf32> to vector<2x96xf32>
    %210 = arith.addf %208, %209 : vector<2x96xf32>
    %211 = vector.extract_strided_slice %207 {offsets = [0, 0], sizes = [2, 32], strides = [1, 1]} : vector<2x96xf32> to vector<2x32xf32>
    %212 = vector.extract_strided_slice %210 {offsets = [0, 0], sizes = [2, 32], strides = [1, 1]} : vector<2x96xf32> to vector<2x32xf32>
    %213 = arith.addf %211, %212 : vector<2x32xf32>
    %214 = arith.negf %213 : vector<2x32xf32>
    %215 = math.exp %214 : vector<2x32xf32>
    %cst_49 = arith.constant 1.000000e+00 : f32
    %216 = vector.broadcast %cst_49 : f32 to vector<2x32xf32>
    %217 = arith.addf %216, %215 : vector<2x32xf32>
    %218 = arith.divf %216, %217 : vector<2x32xf32>
    %219 = vector.extract_strided_slice %207 {offsets = [0, 32], sizes = [2, 32], strides = [1, 1]} : vector<2x96xf32> to vector<2x32xf32>
    %220 = vector.extract_strided_slice %210 {offsets = [0, 32], sizes = [2, 32], strides = [1, 1]} : vector<2x96xf32> to vector<2x32xf32>
    %221 = arith.addf %219, %220 : vector<2x32xf32>
    %222 = arith.negf %221 : vector<2x32xf32>
    %223 = math.exp %222 : vector<2x32xf32>
    %cst_50 = arith.constant 1.000000e+00 : f32
    %224 = vector.broadcast %cst_50 : f32 to vector<2x32xf32>
    %225 = arith.addf %224, %223 : vector<2x32xf32>
    %226 = arith.divf %224, %225 : vector<2x32xf32>
    %227 = vector.extract_strided_slice %207 {offsets = [0, 64], sizes = [2, 32], strides = [1, 1]} : vector<2x96xf32> to vector<2x32xf32>
    %228 = vector.extract_strided_slice %210 {offsets = [0, 64], sizes = [2, 32], strides = [1, 1]} : vector<2x96xf32> to vector<2x32xf32>
    %229 = arith.mulf %218, %228 : vector<2x32xf32>
    %230 = arith.addf %227, %229 : vector<2x32xf32>
    %231 = math.tanh %230 : vector<2x32xf32>
    %cst_51 = arith.constant 1.000000e+00 : f32
    %232 = vector.broadcast %cst_51 : f32 to vector<2x32xf32>
    %233 = arith.subf %232, %226 : vector<2x32xf32>
    %234 = arith.mulf %233, %231 : vector<2x32xf32>
    %235 = arith.mulf %226, %203 : vector<2x32xf32>
    %236 = arith.addf %234, %235 : vector<2x32xf32>
    %c0_52 = arith.constant 0 : index
    %c6 = arith.constant 6 : index
    %c0_53 = arith.constant 0 : index
    %237 = vector.load %arg12[%c0_52, %c6, %c0_53] : memref<2x8x32xf32, #tpu.memory_space<vmem>>, vector<2x1x32xf32>
    %238 = vector.shape_cast %237 : vector<2x1x32xf32> to vector<2x32xf32>
    %239 = vector.shape_cast %236 : vector<2x32xf32> to vector<2x1x32xf32>
    tpu.vector_store %arg12[%c0_52, %c6, %c0_53], %239 {strides = array<i32>} : memref<2x8x32xf32, #tpu.memory_space<vmem>>, vector<2x1x32xf32>,
    %240 = vector.extract_strided_slice %5 {offsets = [14, 0], sizes = [2, 96], strides = [1, 1]} : vector<16x96xf32> to vector<2x96xf32>
    %cst_54 = arith.constant dense<0.000000e+00> : vector<2x96xf32>
    %241 = tpu.matmul %236, %6, %cst_54 {dimension_numbers = #tpu.dot_dimension_numbers<[1], [0], [0], [1], [0, 0, 1, 1], [], []>} : vector<2x32xf32>, vector<32x96xf32>, vector<2x96xf32> -> vector<2x96xf32>
    %242 = vector.broadcast %7 : vector<1x96xf32> to vector<2x96xf32>
    %243 = arith.addf %241, %242 : vector<2x96xf32>
    %244 = vector.extract_strided_slice %240 {offsets = [0, 0], sizes = [2, 32], strides = [1, 1]} : vector<2x96xf32> to vector<2x32xf32>
    %245 = vector.extract_strided_slice %243 {offsets = [0, 0], sizes = [2, 32], strides = [1, 1]} : vector<2x96xf32> to vector<2x32xf32>
    %246 = arith.addf %244, %245 : vector<2x32xf32>
    %247 = arith.negf %246 : vector<2x32xf32>
    %248 = math.exp %247 : vector<2x32xf32>
    %cst_55 = arith.constant 1.000000e+00 : f32
    %249 = vector.broadcast %cst_55 : f32 to vector<2x32xf32>
    %250 = arith.addf %249, %248 : vector<2x32xf32>
    %251 = arith.divf %249, %250 : vector<2x32xf32>
    %252 = vector.extract_strided_slice %240 {offsets = [0, 32], sizes = [2, 32], strides = [1, 1]} : vector<2x96xf32> to vector<2x32xf32>
    %253 = vector.extract_strided_slice %243 {offsets = [0, 32], sizes = [2, 32], strides = [1, 1]} : vector<2x96xf32> to vector<2x32xf32>
    %254 = arith.addf %252, %253 : vector<2x32xf32>
    %255 = arith.negf %254 : vector<2x32xf32>
    %256 = math.exp %255 : vector<2x32xf32>
    %cst_56 = arith.constant 1.000000e+00 : f32
    %257 = vector.broadcast %cst_56 : f32 to vector<2x32xf32>
    %258 = arith.addf %257, %256 : vector<2x32xf32>
    %259 = arith.divf %257, %258 : vector<2x32xf32>
    %260 = vector.extract_strided_slice %240 {offsets = [0, 64], sizes = [2, 32], strides = [1, 1]} : vector<2x96xf32> to vector<2x32xf32>
    %261 = vector.extract_strided_slice %243 {offsets = [0, 64], sizes = [2, 32], strides = [1, 1]} : vector<2x96xf32> to vector<2x32xf32>
    %262 = arith.mulf %251, %261 : vector<2x32xf32>
    %263 = arith.addf %260, %262 : vector<2x32xf32>
    %264 = math.tanh %263 : vector<2x32xf32>
    %cst_57 = arith.constant 1.000000e+00 : f32
    %265 = vector.broadcast %cst_57 : f32 to vector<2x32xf32>
    %266 = arith.subf %265, %259 : vector<2x32xf32>
    %267 = arith.mulf %266, %264 : vector<2x32xf32>
    %268 = arith.mulf %259, %236 : vector<2x32xf32>
    %269 = arith.addf %267, %268 : vector<2x32xf32>
    %c0_58 = arith.constant 0 : index
    %c7 = arith.constant 7 : index
    %c0_59 = arith.constant 0 : index
    %270 = vector.load %arg12[%c0_58, %c7, %c0_59] : memref<2x8x32xf32, #tpu.memory_space<vmem>>, vector<2x1x32xf32>
    %271 = vector.shape_cast %270 : vector<2x1x32xf32> to vector<2x32xf32>
    %272 = vector.shape_cast %269 : vector<2x32xf32> to vector<2x1x32xf32>
    tpu.vector_store %arg12[%c0_58, %c7, %c0_59], %272 {strides = array<i32>} : memref<2x8x32xf32, #tpu.memory_space<vmem>>, vector<2x1x32xf32>,
    %c0_60 = arith.constant 0 : index
    %c0_61 = arith.constant 0 : index
    %273 = vector.load %arg11[%c0_60, %c0_61] : memref<2x32xf32, #tpu.memory_space<vmem>>, vector<2x32xf32>
    tpu.vector_store %arg11[%c0_60, %c0_61], %269 {strides = array<i32>} : memref<2x32xf32, #tpu.memory_space<vmem>>, vector<2x32xf32>,
    %c0_62 = arith.constant 0 : index
    %c0_63 = arith.constant 0 : index
    %c0_64 = arith.constant 0 : index
    %274 = vector.load %arg12[%c0_62, %c0_63, %c0_64] : memref<2x8x32xf32, #tpu.memory_space<vmem>>, vector<2x8x32xf32>
    %c0_65 = arith.constant 0 : index
    %c0_66 = arith.constant 0 : index
    %c0_67 = arith.constant 0 : index
    %275 = vector.load %arg6[%c0_65, %c0_66, %c0_67] : memref<2x10x32xf32, #tpu.memory_space<vmem>>, vector<2x10x32xf32>
    "tpu.trace_start"() <{level = 10 : i32, message = "bth,bsh->bts"}> : () -> ()
    %cst_68 = arith.constant dense<0.000000e+00> : vector<2x8x10xf32>
    %276 = tpu.matmul %274, %275, %cst_68 {dimension_numbers = #tpu.dot_dimension_numbers<[2], [2], [1], [1], [0, 0, 0, 1, 1, 1], [0], [0]>} : vector<2x8x32xf32>, vector<2x10x32xf32>, vector<2x8x10xf32> -> vector<2x8x10xf32>
    "tpu.trace_stop"() : () -> ()
    %cst_69 = arith.constant dense<0xFF800000> : vector<2x8xf32>
    %277 = vector.multi_reduction <maximumf>, %276, %cst_69 [2] : vector<2x8x10xf32> to vector<2x8xf32>
    %278 = vector.shape_cast %277 : vector<2x8xf32> to vector<2x8x1xf32>
    %279 = vector.broadcast %278 : vector<2x8x1xf32> to vector<2x8x10xf32>
    %280 = arith.subf %276, %279 : vector<2x8x10xf32>
    %281 = math.exp %280 : vector<2x8x10xf32>
    %cst_70 = arith.constant dense<0.000000e+00> : vector<2x8xf32>
    %282 = vector.multi_reduction <add>, %281, %cst_70 [2] : vector<2x8x10xf32> to vector<2x8xf32>
    %283 = vector.shape_cast %282 : vector<2x8xf32> to vector<2x8x1xf32>
    %284 = tpu.reciprocal %283 {approx = true} : vector<2x8x1xf32> -> vector<2x8x1xf32>
    %285 = vector.broadcast %284 : vector<2x8x1xf32> to vector<2x8x10xf32>
    %286 = arith.mulf %281, %285 : vector<2x8x10xf32>
    "tpu.trace_start"() <{level = 10 : i32, message = "bts,bsh->bth"}> : () -> ()
    %cst_71 = arith.constant dense<0.000000e+00> : vector<2x8x32xf32>
    %287 = tpu.matmul %286, %275, %cst_71 {dimension_numbers = #tpu.dot_dimension_numbers<[2], [1], [1], [2], [0, 0, 0, 1, 1, 2], [0], [0]>} : vector<2x8x10xf32>, vector<2x10x32xf32>, vector<2x8x32xf32> -> vector<2x8x32xf32>
    "tpu.trace_stop"() : () -> ()
    %c0_72 = arith.constant 0 : index
    %c0_73 = arith.constant 0 : index
    %288 = vector.load %arg7[%c0_72, %c0_73] : memref<32x128xf32, #tpu.memory_space<vmem>>, vector<32x128xf32>
    "tpu.trace_start"() <{level = 10 : i32, message = "bth,ho->bto"}> : () -> ()
    %cst_74 = arith.constant dense<0.000000e+00> : vector<2x8x128xf32>
    %289 = tpu.matmul %274, %288, %cst_74 {dimension_numbers = #tpu.dot_dimension_numbers<[2], [0], [0, 1], [1], [0, 0, 0, 1, 1, 1], [], []>} : vector<2x8x32xf32>, vector<32x128xf32>, vector<2x8x128xf32> -> vector<2x8x128xf32>
    "tpu.trace_stop"() : () -> ()
    %c0_75 = arith.constant 0 : index
    %c0_76 = arith.constant 0 : index
    %290 = vector.load %arg8[%c0_75, %c0_76] : memref<32x128xf32, #tpu.memory_space<vmem>>, vector<32x128xf32>
    "tpu.trace_start"() <{level = 10 : i32, message = "bth,ho->bto"}> : () -> ()
    %cst_77 = arith.constant dense<0.000000e+00> : vector<2x8x128xf32>
    %291 = tpu.matmul %287, %290, %cst_77 {dimension_numbers = #tpu.dot_dimension_numbers<[2], [0], [0, 1], [1], [0, 0, 0, 1, 1, 1], [], []>} : vector<2x8x32xf32>, vector<32x128xf32>, vector<2x8x128xf32> -> vector<2x8x128xf32>
    "tpu.trace_stop"() : () -> ()
    %292 = arith.addf %289, %291 : vector<2x8x128xf32>
    %c0_78 = arith.constant 0 : index
    %c0_79 = arith.constant 0 : index
    %c0_80 = arith.constant 0 : index
    %293 = vector.load %arg9[%c0_78, %c0_79, %c0_80] : memref<1x1x128xf32, #tpu.memory_space<vmem>>, vector<1x1x128xf32>
    %294 = vector.broadcast %293 : vector<1x1x128xf32> to vector<2x8x128xf32>
    %295 = arith.addf %292, %294 : vector<2x8x128xf32>
    %cst_81 = arith.constant dense<0xFF800000> : vector<2x8xf32>
    %296 = vector.multi_reduction <maximumf>, %295, %cst_81 [2] : vector<2x8x128xf32> to vector<2x8xf32>
    %297 = vector.shape_cast %296 : vector<2x8xf32> to vector<2x8x1xf32>
    %298 = vector.broadcast %297 : vector<2x8x1xf32> to vector<2x8x128xf32>
    %299 = arith.subf %295, %298 : vector<2x8x128xf32>
    %300 = math.exp %299 : vector<2x8x128xf32>
    %cst_82 = arith.constant dense<0.000000e+00> : vector<2x8xf32>
    %301 = vector.multi_reduction <add>, %300, %cst_82 [2] : vector<2x8x128xf32> to vector<2x8xf32>
    %302 = vector.shape_cast %301 : vector<2x8xf32> to vector<2x8x1xf32>
    %303 = tpu.reciprocal %302 {approx = true} : vector<2x8x1xf32> -> vector<2x8x1xf32>
    %304 = vector.broadcast %303 : vector<2x8x1xf32> to vector<2x8x128xf32>
    %305 = arith.mulf %300, %304 : vector<2x8x128xf32>
    %c0_83 = arith.constant 0 : index
    %c0_84 = arith.constant 0 : index
    %c0_85 = arith.constant 0 : index
    %306 = vector.load %arg10[%c0_83, %c0_84, %c0_85] : memref<2x8x128xf32, #tpu.memory_space<vmem>>, vector<2x8x128xf32>
    tpu.vector_store %arg10[%c0_83, %c0_84, %c0_85], %305 {strides = array<i32>} : memref<2x8x128xf32, #tpu.memory_space<vmem>>, vector<2x8x128xf32>,
    return
  }
}

</mosaic_0001>

<bundles_post_ra>
// kernel: decoder_forward.1
= control target key start
LH: loop header
LB: loop body
LE: loop exit
PB: predicated region body
PF: predicated region fallthrough
CT: control target
= control target key end

     0   :  { %17 = vsyncpa [#allocation4], 0  ;;  %v2234_v2 = vmov 0.0   ;;  %vm50_vm0 = vcmask 130048   ;;  %s2707_s0 = inlined_call_operand.vmem [shape: f32[16,16], index: 0, kind: input, shape index: {}]   ;;  %s2708_s1 = inlined_call_operand.vmem [shape: f32[2,32], index: 1, kind: input, shape index: {}]   ;;  %s2709_s2 = inlined_call_operand.vmem [shape: f32[16,96], index: 2, kind: input, shape index: {}]   ;;  %s2710_s3 = inlined_call_operand.vmem [shape: f32[32,96], index: 3, kind: input, shape index: {}]   ;;  %s2711_s4 = inlined_call_operand.vmem [shape: f32[1,96], index: 4, kind: input, shape index: {}]   ;;  %s2712_s5 = inlined_call_operand.vmem [shape: f32[1,96], index: 5, kind: input, shape index: {}]   ;;  %s2713_s6 = inlined_call_operand.vmem [shape: f32[2,10,32], index: 6, kind: input, shape index: {}]   ;;  %s2714_s7 = inlined_call_operand.vmem [shape: f32[32,128], index: 7, kind: input, shape index: {}]   ;;  %s2715_s8 = inlined_call_operand.vmem [shape: f32[32,128], index: 8, kind: input, shape index: {}]   ;;  %s2716_s9 = inlined_call_operand.vmem [shape: f32[1,1,128], index: 9, kind: input, shape index: {}]   ;;  %s2717_s10 = inlined_call_operand.hbm [shape: f32[2,8,128], index: 10, kind: output, shape index: {0}]   ;;  %s2718_s11 = inlined_call_operand.hbm [shape: f32[2,32], index: 11, kind: output, shape index: {1}]  }
   0x1   :  { %v2307_v0 = vld [vmem:[%s2710_s3 + $0x18] sm:$0xff]  ;;  %v42_v1 = vld [vmem:[%s2709_s2 + $0x8] sm:$0xff]  ;;  %1978 = vmatprep.subr.mxu1 %v2234_v2  ;;  %v2316_v3 = vld [vmem:[%s2710_s3 + $0x10] sm:$0xff] }
   0x2   :  { %1971 = vmatprep.subr.mxu0 %v42_v1  ;;  %v41_v4 = vld [vmem:[%s2709_s2] sm:$0xff]  ;;  %1979 = vmatpush3.msra.mxu1 %v2307_v0  ;;  %v2329_v6 = vld [vmem:[%s2710_s3 + $0x8] sm:$0xff] }
   0x3   :  { %1972 = vmatpush3.msra.mxu0 %v42_v1  ;;  %v39_v5 = vld [vmem:[%s2707_s0] sm:$0xff]  ;;  %1980 = vmatprep.subr.mxu1 %v2234_v2  ;;  %v40_v7 = vld [vmem:[%s2707_s0 + $0x8] sm:$0xff] }
   0x4   :  { %1973 = vmatprep.subr.mxu0 %v41_v4 }
   0x5   :  { %18 = vsyncpa [#allocation6], 0  ;;  %1981 = vmatpush3.msra.mxu1 %v2316_v3  ;;  %1974 = vmatpush3.msra.mxu0 %v41_v4  ;;  %v2339_v8 = vld [vmem:[%s2710_s3] sm:$0xff]  ;;  %vm144_vm1 = vcmask 261120   ;;  %vm2235_vm2 = vmmov 0   ;;  %s2236_s16 = smov 64  }
   0x6   :  { %1982 = vmatprep.subr.mxu1 %v2234_v2  ;;  %1975 = vmatprep.mubr.msk.f32.mxu0 %vm50_vm0, %v39_v5  ;;  %v137_v9 = vld [vmem:[%s2708_s1] sm:$0x3]  ;;  %vm284_vm3 = vcmask 253952   ;;  %vm1471_vm4 = vcmask 80896   ;;  %vm1497_vm5 = vcmask 1041408   ;;  %vm1305_vm6 = vcmask 261126  }
   0x7   :  { %1983 = vmatpush3.msra.mxu1 %v2329_v6  ;;  %1976 = vmatmul.mubr.msk.f32.vlgmr.msra.gmra.mxu0 %vm50_vm0, %v40_v7  ;;  %v1868_v11 = vld [vmem:[%s2711_s4] ss:$0 sm:$0xff]  ;;  %s2237_s4 = smov 96  }
   0x8   :  { %1984 = vmatprep.subr.mxu1 %v2234_v2  ;;  %1986 = vmatprep.mubr.msk.f32.mxu1 %vm2235_vm2, %v2234_v2  ;;  %v2380_v13 = vld [vmem:[%s2712_s5] ss:$0 sm:$0xff]  ;;  %s2238_s5 = smov 32  }
   0x9   :  { %1985 = vmatpush3.msra.mxu1 %v2339_v8  ;;  %1989 = vmatprep.subr.mxu0 %v2234_v2 }
   0xa   :  { %1987 = vmatmul.mubr.msk.f32.vlgmr.msra.gmra.mxu1 %vm144_vm1, %v137_v9  ;;  %1990 = vmatpush3.msra.mxu0 %v2307_v0 }
   0xb   :  { %1991 = vmatprep.subr.mxu0 %v2234_v2  ;;  %1997 = vmatprep.mubr.msk.f32.mxu0 %vm2235_vm2, %v2234_v2 }
   0xc   :  { %1992 = vmatpush3.msra.mxu0 %v2316_v3  ;;  %2000 = vmatprep.subr.mxu1 %v2234_v2 }
   0xd   :  { %1993 = vmatprep.subr.mxu0 %v2234_v2  ;;  %2001 = vmatpush3.msra.mxu1 %v2307_v0 }
   0xe   :  { %1994 = vmatpush3.msra.mxu0 %v2329_v6  ;;  %2002 = vmatprep.subr.mxu1 %v2234_v2 }
   0xf   :  { %1995 = vmatprep.subr.mxu0 %v2234_v2  ;;  %2003 = vmatpush3.msra.mxu1 %v2316_v3 }
  0x10   :  { %1996 = vmatpush3.msra.mxu0 %v2339_v8  ;;  %2004 = vmatprep.subr.mxu1 %v2234_v2 }
  0x11   :  { %2005 = vmatpush3.msra.mxu1 %v2329_v6  ;;  %2008 = vmatprep.mubr.msk.f32.mxu1 %vm2235_vm2, %v2234_v2 }
  0x12   :  { %2006 = vmatprep.subr.mxu1 %v2234_v2  ;;  %2011 = vmatprep.subr.mxu0 %v2234_v2 }
  0x13   :  { %2007 = vmatpush3.msra.mxu1 %v2339_v8 }
  0x14   :  { %2022 = vmatprep.subr.mxu1 %v2234_v2 }
  0xc7   :  { %v1977_v10 = vpop.f32.mrf.mxu0 }
  0xc8   :  { %v2375_v12 = vadd.f32 %v1977_v10, %v1868_v11 }
  0xc9   :  { %v123_v17 = vpop.f32.mrf.mxu0 }
  0xca   :  { %v214_v14 = vpop.f32.mrf.mxu1  ;;  %v2384_v18 = vadd.f32 %v1868_v11, %v123_v17 }
  0xcb   :  { %v215_v15 = vadd.f32 %v2380_v13, %v214_v14 }
  0xcc   :  { %v1988_v16 = vpop.f32.mrf.mxu1 }
  0xcd   :  { %226 = vrot.lane.b32.xlu0 %v215_v15, %s2236_s16  ;;  %v218_v19 = vadd.f32 %v215_v15, %v2384_v18 }
  0xcf   :  { %v1873_v20 = vmul.f32 -1.442695, %v218_v19 }
  0xd1   :  { %2126 = vpow2.f32 %v1873_v20 }
  0xde   :  { %v2127_v21 = vpop.eup %2126 }
  0xdf   :  { %v222_v22 = vadd.f32 1.0, %v2127_v21 }
  0xe1   :  { %2128 = vrcp.f32 %v222_v22 }
  0xee   :  { %v2129_v23 = vpop.eup %2128 }
  0xef   :  { %v236_v30 = vsub.f32 1.0, %v2129_v23 }
 0x13f   :  { %v227_v24 = vpop.permute.xlu0 %226 }
 0x140   :  { %v229_v25 = vmul.f32 %v2129_v23, %v227_v24 }
 0x142   :  { %231 = vrot.lane.b32.xlu0 %v229_v25, %s2236_s16 }
 0x1b4   :  { %v232_v26 = vpop.permute.xlu0 %231 }
 0x1b5   :  { %v234_v27 = vadd.f32 %v232_v26, %v2384_v18 }
 0x1b7   :  { %2130 = vtanh.f32 %v234_v27 }
 0x1c4   :  { %v2131_v28 = vpop.eup %2130 }
 0x1c5   :  { %238 = vrot.lane.b32.xlu1 %v2131_v28, %s2237_s4 }
 0x1c9   :  { %242 = vrot.lane.b32.xlu1 %v137_v9, %s2238_s5 }
 0x237   :  { %v239_v29 = vpop.permute.xlu1 %238 }
 0x238   :  { %v241_v32 = vmul.f32 %v239_v29, %v236_v30 }
 0x23b   :  { %v243_v31 = vpop.permute.xlu1 %242 }
 0x23c   :  { %v245_v33 = vmul.f32 %v2129_v23, %v243_v31 }
 0x23e   :  { %v2390_v34 = vadd.f32 %v245_v33, %v241_v32 }
 0x240   :  { %287 = vrot.lane.b32.xlu0 %v2390_v34, %s2237_s4  ;;  %v387_v51 = vrot.slane %v2390_v34, 6 }
 0x2b2   :  { %v288_v35 = vpop.permute.xlu0 %287 }
 0x2b3   :  { %1998 = vmatmul.mubr.msk.f32.vlgmr.msra.gmra.mxu0 %vm144_vm1, %v288_v35 }
 0x2b4   :  { %2012 = vmatpush3.msra.mxu0 %v2307_v0  ;;  %2019 = vmatprep.mubr.msk.f32.mxu0 %vm2235_vm2, %v2234_v2 }
 0x2b5   :  { %2013 = vmatprep.subr.mxu0 %v2234_v2 }
 0x2b6   :  { %2014 = vmatpush3.msra.mxu0 %v2316_v3 }
 0x2b7   :  { %2015 = vmatprep.subr.mxu0 %v2234_v2 }
 0x2b8   :  { %2016 = vmatpush3.msra.mxu0 %v2329_v6 }
 0x2b9   :  { %2017 = vmatprep.subr.mxu0 %v2234_v2 }
 0x2ba   :  { %2018 = vmatpush3.msra.mxu0 %v2339_v8 }
 0x2bb   :  { %2033 = vmatprep.subr.mxu0 %v2234_v2 }
 0x373   :  { %v357_v36 = vpop.f32.mrf.mxu0 }
 0x374   :  { %v358_v37 = vadd.f32 %v2380_v13, %v357_v36 }
 0x375   :  { %v1999_v38 = vpop.f32.mrf.mxu0 }
 0x376   :  { %v362_v39 = vrot.slane %v358_v37, 6 }
 0x378   :  { %371 = vrot.lane.b32.xlu1 %v362_v39, %s2236_s16  ;;  %v364_v40 = vadd.f32 %v362_v39, %v2384_v18 }
 0x37a   :  { %v1875_v41 = vmul.f32 -1.442695, %v364_v40 }
 0x37c   :  { %2132 = vpow2.f32 %v1875_v41 }
 0x389   :  { %v2133_v42 = vpop.eup %2132 }
 0x38a   :  { %v368_v43 = vadd.f32 1.0, %v2133_v42 }
 0x38c   :  { %2134 = vrcp.f32 %v368_v43 }
 0x399   :  { %v2135_v44 = vpop.eup %2134 }
 0x39a   :  { %v381_v50 = vsub.f32 1.0, %v2135_v44  ;;  %v389_v54 = vmul.f32 %v2135_v44, %v387_v51 }
 0x3ea   :  { %v372_v45 = vpop.permute.xlu1 %371 }
 0x3eb   :  { %v374_v46 = vmul.f32 %v2135_v44, %v372_v45 }
 0x3ed   :  { %376 = vrot.lane.b32.xlu0 %v374_v46, %s2236_s16 }
 0x45f   :  { %v377_v47 = vpop.permute.xlu0 %376 }
 0x460   :  { %v379_v48 = vadd.f32 %v377_v47, %v2384_v18 }
 0x462   :  { %2136 = vtanh.f32 %v379_v48 }
 0x46f   :  { %v2137_v49 = vpop.eup %2136 }
 0x470   :  { %383 = vrot.lane.b32.xlu1 %v2137_v49, %s2237_s4 }
 0x4e2   :  { %v384_v52 = vpop.permute.xlu1 %383 }
 0x4e3   :  { %v386_v53 = vmul.f32 %v384_v52, %v381_v50 }
 0x4e5   :  { %v2412_v55 = vadd.f32 %v389_v54, %v386_v53 }
 0x4e7   :  { %v432_v56 = vrot.slane %v2412_v55, 2  ;;  %v533_v16 = vrot.slane %v2412_v55, 6 }
 0x4e9   :  { %433 = vrot.lane.b32.xlu0 %v432_v56, %s2237_s4 }
 0x55b   :  { %v434_v57 = vpop.permute.xlu0 %433 }
 0x55c   :  { %2009 = vmatmul.mubr.msk.f32.vlgmr.msra.gmra.mxu1 %vm144_vm1, %v434_v57 }
 0x55d   :  { %2023 = vmatpush3.msra.mxu1 %v2307_v0  ;;  %2030 = vmatprep.mubr.msk.f32.mxu1 %vm2235_vm2, %v2234_v2 }
 0x55e   :  { %2024 = vmatprep.subr.mxu1 %v2234_v2 }
 0x55f   :  { %2025 = vmatpush3.msra.mxu1 %v2316_v3 }
 0x560   :  { %2026 = vmatprep.subr.mxu1 %v2234_v2 }
 0x561   :  { %2027 = vmatpush3.msra.mxu1 %v2329_v6 }
 0x562   :  { %2028 = vmatprep.subr.mxu1 %v2234_v2 }
 0x563   :  { %2029 = vmatpush3.msra.mxu1 %v2339_v8 }
 0x564   :  { %2044 = vmatprep.subr.mxu1 %v2234_v2 }
 0x61c   :  { %v503_v58 = vpop.f32.mrf.mxu1 }
 0x61d   :  { %v504_v59 = vadd.f32 %v2380_v13, %v503_v58 }
 0x61e   :  { %v2010_v60 = vpop.f32.mrf.mxu1 }
 0x61f   :  { %v508_v61 = vrot.slane %v504_v59, 4 }
 0x621   :  { %517 = vrot.lane.b32.xlu1 %v508_v61, %s2236_s16  ;;  %v510_v62 = vadd.f32 %v508_v61, %v2384_v18 }
 0x623   :  { %v1877_v63 = vmul.f32 -1.442695, %v510_v62 }
 0x625   :  { %2138 = vpow2.f32 %v1877_v63 }
 0x632   :  { %v2139_v1 = vpop.eup %2138 }
 0x633   :  { %v514_v4 = vadd.f32 1.0, %v2139_v1 }
 0x635   :  { %2140 = vrcp.f32 %v514_v4 }
 0x642   :  { %v2141_v5 = vpop.eup %2140 }
 0x643   :  { %v527_v15 = vsub.f32 1.0, %v2141_v5  ;;  %v535_v19 = vmul.f32 %v2141_v5, %v533_v16 }
 0x693   :  { %v518_v7 = vpop.permute.xlu1 %517 }
 0x694   :  { %v520_v9 = vmul.f32 %v2141_v5, %v518_v7 }
 0x696   :  { %522 = vrot.lane.b32.xlu0 %v520_v9, %s2236_s16 }
 0x708   :  { %v523_v10 = vpop.permute.xlu0 %522 }
 0x709   :  { %v525_v11 = vadd.f32 %v523_v10, %v2384_v18 }
 0x70b   :  { %2142 = vtanh.f32 %v525_v11 }
 0x718   :  { %v2143_v14 = vpop.eup %2142 }
 0x719   :  { %529 = vrot.lane.b32.xlu1 %v2143_v14, %s2237_s4 }
 0x78b   :  { %v530_v17 = vpop.permute.xlu1 %529 }
 0x78c   :  { %v532_v20 = vmul.f32 %v530_v17, %v527_v15 }
 0x78e   :  { %v2434_v21 = vadd.f32 %v535_v19, %v532_v20 }
 0x790   :  { %v577_v22 = vrot.slane %v2434_v21, 4  ;;  %v678_v40 = vrot.slane %v2434_v21, 6 }
 0x792   :  { %578 = vrot.lane.b32.xlu0 %v577_v22, %s2237_s4 }
 0x804   :  { %v579_v23 = vpop.permute.xlu0 %578 }
 0x805   :  { %2020 = vmatmul.mubr.msk.f32.vlgmr.msra.gmra.mxu0 %vm144_vm1, %v579_v23 }
 0x806   :  { %2034 = vmatpush3.msra.mxu0 %v2307_v0  ;;  %2041 = vmatprep.mubr.msk.f32.mxu0 %vm2235_vm2, %v2234_v2 }
 0x807   :  { %2035 = vmatprep.subr.mxu0 %v2234_v2 }
 0x808   :  { %2036 = vmatpush3.msra.mxu0 %v2316_v3 }
 0x809   :  { %2037 = vmatprep.subr.mxu0 %v2234_v2 }
 0x80a   :  { %2038 = vmatpush3.msra.mxu0 %v2329_v6 }
 0x80b   :  { %2039 = vmatprep.subr.mxu0 %v2234_v2 }
 0x80c   :  { %2040 = vmatpush3.msra.mxu0 %v2339_v8 }
 0x80d   :  { %2055 = vmatprep.subr.mxu0 %v2234_v2 }
 0x8c5   :  { %v648_v24 = vpop.f32.mrf.mxu0 }
 0x8c6   :  { %v649_v25 = vadd.f32 %v2380_v13, %v648_v24 }
 0x8c7   :  { %v2021_v26 = vpop.f32.mrf.mxu0 }
 0x8c8   :  { %v653_v27 = vrot.slane %v649_v25, 2 }
 0x8ca   :  { %662 = vrot.lane.b32.xlu1 %v653_v27, %s2236_s16  ;;  %v655_v28 = vadd.f32 %v653_v27, %v2384_v18 }
 0x8cc   :  { %v1879_v29 = vmul.f32 -1.442695, %v655_v28 }
 0x8ce   :  { %2144 = vpow2.f32 %v1879_v29 }
 0x8db   :  { %v2145_v30 = vpop.eup %2144 }
 0x8dc   :  { %v659_v31 = vadd.f32 1.0, %v2145_v30 }
 0x8de   :  { %2146 = vrcp.f32 %v659_v31 }
 0x8eb   :  { %v2147_v32 = vpop.eup %2146 }
 0x8ec   :  { %v672_v39 = vsub.f32 1.0, %v2147_v32  ;;  %v680_v42 = vmul.f32 %v2147_v32, %v678_v40 }
 0x93c   :  { %v663_v33 = vpop.permute.xlu1 %662 }
 0x93d   :  { %v665_v35 = vmul.f32 %v2147_v32, %v663_v33 }
 0x93f   :  { %667 = vrot.lane.b32.xlu0 %v665_v35, %s2236_s16 }
 0x9b1   :  { %v668_v36 = vpop.permute.xlu0 %667 }
 0x9b2   :  { %v670_v37 = vadd.f32 %v668_v36, %v2384_v18 }
 0x9b4   :  { %2148 = vtanh.f32 %v670_v37 }
 0x9c1   :  { %v2149_v38 = vpop.eup %2148 }
 0x9c2   :  { %674 = vrot.lane.b32.xlu1 %v2149_v38, %s2237_s4 }
 0xa34   :  { %v675_v41 = vpop.permute.xlu1 %674 }
 0xa35   :  { %v677_v43 = vmul.f32 %v675_v41, %v672_v39 }
 0xa37   :  { %v2456_v44 = vadd.f32 %v680_v42, %v677_v43 }
 0xa39   :  { %v724_v45 = vrot.slane %v2456_v44, 6 }
 0xa3b   :  { %725 = vrot.lane.b32.xlu0 %v724_v45, %s2237_s4 }
 0xaad   :  { %v726_v46 = vpop.permute.xlu0 %725 }
 0xaae   :  { %2031 = vmatmul.mubr.msk.f32.vlgmr.msra.gmra.mxu1 %vm144_vm1, %v726_v46 }
 0xaaf   :  { %2045 = vmatpush3.msra.mxu1 %v2307_v0  ;;  %2052 = vmatprep.mubr.msk.f32.mxu1 %vm2235_vm2, %v2234_v2 }
 0xab0   :  { %2046 = vmatprep.subr.mxu1 %v2234_v2 }
 0xab1   :  { %2047 = vmatpush3.msra.mxu1 %v2316_v3 }
 0xab2   :  { %2048 = vmatprep.subr.mxu1 %v2234_v2 }
 0xab3   :  { %2049 = vmatpush3.msra.mxu1 %v2329_v6 }
 0xab4   :  { %2050 = vmatprep.subr.mxu1 %v2234_v2 }
 0xab5   :  { %2051 = vmatpush3.msra.mxu1 %v2339_v8 }
 0xab6   :  { %2066 = vmatprep.subr.mxu1 %v2234_v2 }
 0xb6e   :  { %v795_v18 = vpop.f32.mrf.mxu1 }
 0xb6f   :  { %v796_v47 = vadd.f32 %v2380_v13, %v795_v18 }
 0xb70   :  { %v2032_v48 = vpop.f32.mrf.mxu1 }
 0xb71   :  { %807 = vrot.lane.b32.xlu1 %v796_v47, %s2236_s16  ;;  %v799_v49 = vadd.f32 %v796_v47, %v2375_v12 }
 0xb73   :  { %v1881_v50 = vmul.f32 -1.442695, %v799_v49 }
 0xb75   :  { %2150 = vpow2.f32 %v1881_v50 }
 0xb82   :  { %v2151_v51 = vpop.eup %2150 }
 0xb83   :  { %v803_v52 = vadd.f32 1.0, %v2151_v51 }
 0xb85   :  { %2152 = vrcp.f32 %v803_v52 }
 0xb92   :  { %v2153_v53 = vpop.eup %2152 }
 0xb93   :  { %v817_v60 = vsub.f32 1.0, %v2153_v53  ;;  %v824_v62 = vmul.f32 %v2153_v53, %v724_v45 }
 0xbe3   :  { %v808_v54 = vpop.permute.xlu1 %807 }
 0xbe4   :  { %v810_v56 = vmul.f32 %v2153_v53, %v808_v54 }
 0xbe6   :  { %812 = vrot.lane.b32.xlu0 %v810_v56, %s2236_s16 }
 0xc58   :  { %v813_v57 = vpop.permute.xlu0 %812 }
 0xc59   :  { %v815_v58 = vadd.f32 %v813_v57, %v2375_v12 }
 0xc5b   :  { %2154 = vtanh.f32 %v815_v58 }
 0xc68   :  { %v2155_v59 = vpop.eup %2154 }
 0xc69   :  { %819 = vrot.lane.b32.xlu1 %v2155_v59, %s2237_s4 }
 0xcdb   :  { %v820_v61 = vpop.permute.xlu1 %819 }
 0xcdc   :  { %v822_v63 = vmul.f32 %v820_v61, %v817_v60  ;;  %v2239_v61 = vmov 1966171168  }
 0xcde   :  { %v2477_v1 = vadd.f32 %v824_v62, %v822_v63  ;;  %v249_v62 = vunpack.c.l.s4 %v2239_v61  ;;  %v251_v63 = vlaneseq }
 0xce0   :  { %865 = vrot.lane.b32.xlu0 %v2477_v1, %s2237_s4  ;;  %v965_v22 = vrot.slane %v2477_v1, 6 }
 0xd52   :  { %v866_v4 = vpop.permute.xlu0 %865 }
 0xd53   :  { %2042 = vmatmul.mubr.msk.f32.vlgmr.msra.gmra.mxu0 %vm144_vm1, %v866_v4  ;;  %v250_v4 = vunpack.c.0.s8 %v249_v62 }
 0xd54   :  { %2056 = vmatpush3.msra.mxu0 %v2307_v0  ;;  %2063 = vmatprep.mubr.msk.f32.mxu0 %vm2235_vm2, %v2234_v2 }
 0xd55   :  { %2057 = vmatprep.subr.mxu0 %v2234_v2 }
 0xd56   :  { %2058 = vmatpush3.msra.mxu0 %v2316_v3 }
 0xd57   :  { %2059 = vmatprep.subr.mxu0 %v2234_v2 }
 0xd58   :  { %2060 = vmatpush3.msra.mxu0 %v2329_v6 }
 0xd59   :  { %2061 = vmatprep.subr.mxu0 %v2234_v2 }
 0xd5a   :  { %2062 = vmatpush3.msra.mxu0 %v2339_v8 }
 0xd5b   :  { %2073 = vmatprep.subr.mxu0 %v2234_v2 }
 0xe13   :  { %v935_v5 = vpop.f32.mrf.mxu0 }
 0xe14   :  { %v936_v0 = vadd.f32 %v2380_v13, %v935_v5  ;;  %v252_v5 = vshrl.u32 %v251_v63, 7 }
 0xe15   :  { %v2043_v7 = vpop.f32.mrf.mxu0 }
 0xe16   :  { %v940_v9 = vrot.slane %v936_v0, 6  ;;  %v2523_v0 = vsub.s32 %v250_v4, %v252_v5  ;;  %v538_v7 = vcombine.high %v2434_v21, %v2434_v21 }
 0xe18   :  { %949 = vrot.lane.b32.xlu1 %v940_v9, %s2236_s16  ;;  %v942_v10 = vadd.f32 %v940_v9, %v2375_v12 }
 0xe1a   :  { %v1883_v3 = vmul.f32 -1.442695, %v942_v10 }
 0xe1c   :  { %2156 = vpow2.f32 %v1883_v3 }
 0xe29   :  { %v2157_v11 = vpop.eup %2156 }
 0xe2a   :  { %v946_v14 = vadd.f32 1.0, %v2157_v11 }
 0xe2c   :  { %2158 = vrcp.f32 %v946_v14  ;;  %v2533_v14 = vsub.s32 0, %v252_v5 }
 0xe39   :  { %v2159_v6 = vpop.eup %2158 }
 0xe3a   :  { %v959_v20 = vsub.f32 1.0, %v2159_v6  ;;  %v967_v25 = vmul.f32 %v2159_v6, %v965_v22 }
 0xe8a   :  { %v950_v15 = vpop.permute.xlu1 %949 }
 0xe8b   :  { %v952_v16 = vmul.f32 %v2159_v6, %v950_v15  ;;  %v545_v6 = vrot.slane %v538_v7, %v2523_v0  ;;  %v833_v15 = vrot.slane %v2477_v1, %v2523_v0 }
 0xe8d   :  { %954 = vrot.lane.b32.xlu0 %v952_v16, %s2236_s16  ;;  %v553_v16 = vrot.slane %v545_v6, %v2523_v0 }
 0xeff   :  { %v955_v8 = vpop.permute.xlu0 %954 }
 0xf00   :  { %v957_v17 = vadd.f32 %v955_v8, %v2375_v12  ;;  %v564_v8 = vrot.slane %v553_v16, %v2533_v14 }
 0xf02   :  { %2160 = vtanh.f32 %v957_v17  ;;  %v841_v17 = vrot.slane %v833_v15, %v2523_v0 }
 0xf0f   :  { %v2161_v19 = vpop.eup %2160 }
 0xf10   :  { %961 = vrot.lane.b32.xlu1 %v2161_v19, %s2237_s4 }
 0xf82   :  { %v962_v23 = vpop.permute.xlu1 %961 }
 0xf83   :  { %v964_v24 = vmul.f32 %v962_v23, %v959_v20  ;;  %v852_v20 = vrot.slane %v841_v17, %v2533_v14 }
 0xf85   :  { %v2499_v26 = vadd.f32 %v967_v25, %v964_v24  ;;  %v546_v25 = vcombine.high %v545_v6, %v545_v6 }
 0xf87   :  { %v1010_v27 = vrot.slane %v2499_v26, 2  ;;  %v1111_v46 = vrot.slane %v2499_v26, 6 }
 0xf89   :  { %1011 = vrot.lane.b32.xlu0 %v1010_v27, %s2237_s4 }
 0xffb   :  { %v1012_v28 = vpop.permute.xlu0 %1011 }
 0xffc   :  { %2053 = vmatmul.mubr.msk.f32.vlgmr.msra.gmra.mxu1 %vm144_vm1, %v1012_v28  ;;  %v560_v28 = vrot.slane %v546_v25, %v2523_v0  ;;  %v1311_v25 = vld [vmem:[%s2713_s6 + $0x10] sm:$0xff] }
 0xffd   :  { %2070 = vmatprep.mubr.msk.f32.mxu1 %vm2235_vm2, %v2234_v2 }
0x10bc   :  { %v1081_v29 = vpop.f32.mrf.mxu1 }
0x10bd   :  { %v1082_v30 = vadd.f32 %v2380_v13, %v1081_v29  ;;  %v834_v29 = vcombine.high %v833_v15, %v833_v15 }
0x10be   :  { %v2054_v31 = vpop.f32.mrf.mxu1 }
0x10bf   :  { %v1086_v32 = vrot.slane %v1082_v30, 4  ;;  %v568_v30 = vrot.slane %v560_v28, %v2533_v14  ;;  %v848_v31 = vrot.slane %v834_v29, %v2523_v0 }
0x10c1   :  { %1095 = vrot.lane.b32.xlu1 %v1086_v32, %s2236_s16  ;;  %v1088_v33 = vadd.f32 %v1086_v32, %v2375_v12 }
0x10c3   :  { %v1885_v35 = vmul.f32 -1.442695, %v1088_v33  ;;  %v856_v33 = vrot.slane %v848_v31, %v2533_v14 }
0x10c5   :  { %2162 = vpow2.f32 %v1885_v35 }
0x10d2   :  { %v2163_v36 = vpop.eup %2162 }
0x10d3   :  { %v1092_v37 = vadd.f32 1.0, %v2163_v36 }
0x10d5   :  { %2164 = vrcp.f32 %v1092_v37 }
0x10e2   :  { %v2165_v38 = vpop.eup %2164 }
0x10e3   :  { %v1105_v45 = vsub.f32 1.0, %v2165_v38  ;;  %v1113_v47 = vmul.f32 %v2165_v38, %v1111_v46 }
0x1133   :  { %v1096_v39 = vpop.permute.xlu1 %1095 }
0x1134   :  { %v1098_v40 = vmul.f32 %v2165_v38, %v1096_v39 }
0x1136   :  { %1100 = vrot.lane.b32.xlu0 %v1098_v40, %s2236_s16  ;;  %v398_v40 = vrot.slane %v2412_v55, %v2523_v0 }
0x11a8   :  { %v1101_v41 = vpop.permute.xlu0 %1100 }
0x11a9   :  { %v1103_v42 = vadd.f32 %v1101_v41, %v2375_v12  ;;  %v683_v41 = vcombine.high %v2456_v44, %v2456_v44 }
0x11ab   :  { %2166 = vtanh.f32 %v1103_v42 }
0x11b8   :  { %v2167_v43 = vpop.eup %2166 }
0x11b9   :  { %1107 = vrot.lane.b32.xlu1 %v2167_v43, %s2237_s4  ;;  %v690_v43 = vrot.slane %v683_v41, %v2523_v0 }
0x122b   :  { %v1108_v18 = vpop.permute.xlu1 %1107 }
0x122c   :  { %v1110_v48 = vmul.f32 %v1108_v18, %v1105_v45  ;;  %v406_v45 = vrot.slane %v398_v40, %v2523_v0 }
0x122e   :  { %v2513_v49 = vadd.f32 %v1113_v47, %v1110_v48  ;;  %v414_v18 = vcombine.high %v406_v45, %v406_v45  ;;  %v698_v47 = vrot.slane %v690_v43, %v2523_v0 }
0x1230   :  { %v1155_v50 = vrot.slane %v2513_v49, 4  ;;  %v419_v44 = vrot.slane %v414_v18, %v2533_v14  ;;  %v1256_v15 = vrot.slane %v2513_v49, 6 }
0x1232   :  { %1156 = vrot.lane.b32.xlu0 %v1155_v50, %s2237_s4  ;;  %v706_v50 = vcombine.high %v698_v47, %v698_v47 }
0x12a4   :  { %v1157_v51 = vpop.permute.xlu0 %1156 }
0x12a5   :  { %2064 = vmatmul.mubr.msk.f32.vlgmr.msra.gmra.mxu0 %vm144_vm1, %v1157_v51 }
0x12a6   :  { %2077 = vmatprep.mubr.msk.f32.mxu0 %vm2235_vm2, %v2234_v2 }
0x1365   :  { %v1226_v52 = vpop.f32.mrf.mxu0 }
0x1366   :  { %v1227_v53 = vadd.f32 %v2380_v13, %v1226_v52  ;;  %v254_v13 = vrot.slane %v2390_v34, %v2523_v0  ;;  %v1116_v34 = vcombine.high %v2513_v49, %v2513_v49  ;;  %v399_v52 = vcombine.high %v398_v40, %v398_v40 }
0x1367   :  { %v2065_v54 = vpop.f32.mrf.mxu0 }
0x1368   :  { %v1231_v56 = vrot.slane %v1227_v53, 2  ;;  %v262_v11 = vrot.slane %v254_v13, %v2523_v0  ;;  %v1123_v19 = vrot.slane %v1116_v34, %v2523_v0  ;;  %v255_v22 = vcombine.high %v254_v13, %v254_v13 }
0x136a   :  { %1240 = vrot.lane.b32.xlu1 %v1231_v56, %s2236_s16  ;;  %v1233_v57 = vadd.f32 %v1231_v56, %v2375_v12  ;;  %v273_v21 = vrot.slane %v262_v11, %v2533_v14  ;;  %v1131_v1 = vrot.slane %v1123_v19, %v2523_v0  ;;  %v269_v24 = vrot.slane %v255_v22, %v2523_v0 }
0x136b   :  { %v1124_v32 = vcombine.high %v1123_v19, %v1123_v19  ;;  %v413_v56 = vrot.slane %v399_v52, %v2523_v0 }
0x136c   :  { %v1887_v58 = vmul.f32 -1.442695, %v1233_v57  ;;  %v1142_v23 = vrot.slane %v1131_v1, %v2533_v14  ;;  %v277_v27 = vrot.slane %v269_v24, %v2533_v14  ;;  %v691_v57 = vcombine.high %v690_v43, %v690_v43 }
0x136d   :  { %v1138_v35 = vrot.slane %v1124_v32, %v2523_v0 }
0x136e   :  { %2168 = vpow2.f32 %v1887_v58  ;;  %v705_v61 = vrot.slane %v691_v57, %v2523_v0 }
0x136f   :  { %v1146_v36 = vrot.slane %v1138_v35, %v2533_v14 }
0x1370   :  { %v707_v5 = vcombine.high %v705_v61, %v705_v61  ;;  %v1647_v61 = vld [vmem:[%s2714_s7 + $0x10] sm:$0xff] }
0x137b   :  { %v2169_v59 = vpop.eup %2168 }
0x137c   :  { %v1237_v60 = vadd.f32 1.0, %v2169_v59 }
0x137e   :  { %2170 = vrcp.f32 %v1237_v60  ;;  %v415_v60 = vcombine.high %v413_v56, %v413_v56 }
0x1380   :  { %v423_v4 = vrot.slane %v415_v60, %v2533_v14 }
0x138b   :  { %v2529_v9 = vpop.eup %2170 }
0x138c   :  { %v1250_v6 = vsub.f32 1.0, %v2529_v9 }
0x13dc   :  { %v1241_v10 = vpop.permute.xlu1 %1240 }
0x13dd   :  { %v1243_v3 = vmul.f32 %v2529_v9, %v1241_v10  ;;  %v715_v10 = vrot.slane %v707_v5, %v2533_v14  ;;  %v1649_v5 = vld [vmem:[%s2715_s8] sm:$0xff] }
0x13df   :  { %1245 = vrot.lane.b32.xlu0 %v1243_v3, %s2236_s16 }
0x13e3   :  { %278 = vrot.lane.b32.xlu0 %v273_v21, %s2237_s4  ;;  %v1258_v21 = vmul.f32 %v2529_v9, %v1256_v15  ;;  %v2619_v9 = vld [vmem:[%s2713_s6] sm:$0xff] }
0x13e4   :  { %v1902_v15 = vld [vmem:[%s2716_s9] ss:$0 sm:$0xff] }
0x13e7   :  { %569 = vrot.lane.b32.xlu0 %v564_v8, %s2237_s4  ;;  %v2606_v8 = vld [vmem:[%s2713_s6 + $0x8] sm:$0x3] }
0x13e8   :  { %2067 = vmatpush3.xpose.msk.msra.mxu1 %vm144_vm1, %v2606_v8 }
0x13e9   :  { %2068 = vmatprep.subr.mxu1 %v2234_v2 }
0x13eb   :  { %857 = vrot.lane.b32.xlu0 %v852_v20, %s2237_s4  ;;  %v2624_v20 = vld [vmem:[%s2713_s6 + $0x18] sm:$0x3] }
0x13ec   :  { %2069 = vmatpush3.xpose.msk.msra.mxu1 %vm144_vm1, %v2619_v9  ;;  %2074 = vmatpush3.xpose.msk.msra.mxu0 %vm144_vm1, %v2624_v20 }
0x13ed   :  { %2075 = vmatprep.subr.mxu0 %v2234_v2  ;;  %2080 = vmatprep.subr.mxu1 %v2234_v2 }
0x13ef   :  { %1147 = vrot.lane.b32.xlu0 %v1142_v23, %s2237_s4 }
0x13f0   :  { %2076 = vmatpush3.xpose.msk.msra.mxu0 %vm144_vm1, %v1311_v25 }
0x13f1   :  { %2087 = vmatprep.subr.mxu0 %v2234_v2 }
0x13f3   :  { %280 = vrot.lane.b32.xlu0 %v277_v27, %s2237_s4 }
0x13f7   :  { %571 = vrot.lane.b32.xlu0 %v568_v30, %s2237_s4 }
0x13fb   :  { %859 = vrot.lane.b32.xlu0 %v856_v33, %s2237_s4 }
0x13ff   :  { %1149 = vrot.lane.b32.xlu0 %v1146_v36, %s2237_s4 }
0x1451   :  { %v1246_v37 = vpop.permute.xlu0 %1245 }
0x1452   :  { %v1248_v38 = vadd.f32 %v1246_v37, %v2375_v12  ;;  %v976_v12 = vrot.slane %v2499_v26, %v2523_v0  ;;  %v711_v26 = vrot.slane %v706_v50, %v2533_v14 }
0x1454   :  { %2172 = vtanh.f32 %v1248_v38  ;;  %v984_v51 = vrot.slane %v976_v12, %v2523_v0  ;;  %v977_v62 = vcombine.high %v976_v12, %v976_v12 }
0x1455   :  { %v279_v39 = vpop.permute.xlu0 %278 }
0x1456   :  { %285 = vst.msk [vmem:[#allocation2] sm:$0x1] %vm284_vm3, %v279_v39  ;;  %v992_v54 = vcombine.high %v984_v51, %v984_v51  ;;  %v991_v13 = vrot.slane %v977_v62, %v2523_v0  ;;  %v1646_v62 = vld [vmem:[%s2714_s7 + $0x8] sm:$0xff] }
0x1458   :  { %v997_v59 = vrot.slane %v992_v54, %v2533_v14  ;;  %v993_v3 = vcombine.high %v991_v13, %v991_v13 }
0x1459   :  { %v570_v42 = vpop.permute.xlu0 %569 }
0x145a   :  { %575 = vst.msk [vmem:[#allocation2 + $0x2] sm:$0x1] %vm284_vm3, %v570_v42  ;;  %v1001_v11 = vrot.slane %v993_v3, %v2533_v14 }
0x145d   :  { %v858_v46 = vpop.permute.xlu0 %857 }
0x145e   :  { %863 = vst.msk [vmem:[#allocation2 + $0x4] sm:$0x1] %vm284_vm3, %v858_v46 }
0x1461   :  { %v2173_v55 = vpop.eup %2172  ;;  %v1148_v48 = vpop.permute.xlu0 %1147 }
0x1462   :  { %1153 = vst.msk [vmem:[#allocation2 + $0x6] sm:$0x1] %vm284_vm3, %v1148_v48  ;;  %1252 = vrot.lane.b32.xlu1 %v2173_v55, %s2237_s4 }
0x1465   :  { %v281_v53 = vpop.permute.xlu0 %280 }
0x1466   :  { %286 = vst.msk [vmem:[#allocation2 + $0x8] sm:$0x1] %vm284_vm3, %v281_v53  ;;  %424 = vrot.lane.b32.xlu1 %v419_v44, %s2237_s4  ;;  %v1648_v53 = vld [vmem:[%s2714_s7 + $0x18] sm:$0xff] }
0x1469   :  { %v572_v58 = vpop.permute.xlu0 %571 }
0x146a   :  { %576 = vst.msk [vmem:[#allocation2 + $0xa] sm:$0x1] %vm284_vm3, %v572_v58  ;;  %716 = vrot.lane.b32.xlu1 %v711_v26, %s2237_s4  ;;  %v1652_v26 = vld [vmem:[%s2715_s8 + $0x18] sm:$0xff] }
0x146d   :  { %v860_v63 = vpop.permute.xlu0 %859 }
0x146e   :  { %864 = vst.msk [vmem:[#allocation2 + $0xc] sm:$0x1] %vm284_vm3, %v860_v63  ;;  %1002 = vrot.lane.b32.xlu1 %v997_v59, %s2237_s4  ;;  %v1645_v63 = vld [vmem:[%s2714_s7] sm:$0xff] }
0x1471   :  { %v1150_v7 = vpop.permute.xlu0 %1149 }
0x1472   :  { %1154 = vst.msk [vmem:[#allocation2 + $0xe] sm:$0x1] %vm284_vm3, %v1150_v7  ;;  %426 = vrot.lane.b32.xlu1 %v423_v4, %s2237_s4  ;;  %v1650_v4 = vld [vmem:[%s2715_s8 + $0x8] sm:$0xff] }
0x1476   :  { %718 = vrot.lane.b32.xlu1 %v715_v10, %s2237_s4 }
0x147a   :  { %1004 = vrot.lane.b32.xlu1 %v1001_v11, %s2237_s4 }
0x14d4   :  { %v1253_v34 = vpop.permute.xlu1 %1252 }
0x14d5   :  { %v1255_v16 = vmul.f32 %v1253_v34, %v1250_v6 }
0x14d7   :  { %v2608_v17 = vadd.f32 %v1258_v21, %v1255_v16 }
0x14d8   :  { %v425_v19 = vpop.permute.xlu1 %424 }
0x14d9   :  { %v1261_v49 = vcombine.high %v2608_v17, %v2608_v17  ;;  %430 = vst.msk [vmem:[#allocation2 + $0x1] sm:$0x1] %vm284_vm3, %v425_v19 }
0x14db   :  { %v1268_v1 = vrot.slane %v1261_v49, %v2523_v0 }
0x14dc   :  { %v717_v22 = vpop.permute.xlu1 %716 }
0x14dd   :  { %722 = vst.msk [vmem:[#allocation2 + $0x3] sm:$0x1] %vm284_vm3, %v717_v22  ;;  %v1276_v23 = vrot.slane %v1268_v1, %v2523_v0  ;;  %v1269_v24 = vcombine.high %v1268_v1, %v1268_v1 }
0x14df   :  { %v1284_v27 = vcombine.high %v1276_v23, %v1276_v23  ;;  %v1283_v28 = vrot.slane %v1269_v24, %v2523_v0 }
0x14e0   :  { %v1003_v29 = vpop.permute.xlu1 %1002 }
0x14e1   :  { %1008 = vst.msk [vmem:[#allocation2 + $0x5] sm:$0x1] %vm284_vm3, %v1003_v29  ;;  %v1289_v30 = vrot.slane %v1284_v27, %v2533_v14  ;;  %v1285_v31 = vcombine.high %v1283_v28, %v1283_v28 }
0x14e3   :  { %1294 = vrot.lane.b32.xlu1 %v1289_v30, %s2237_s4  ;;  %v1293_v33 = vrot.slane %v1285_v31, %v2533_v14 }
0x14e4   :  { %v427_v32 = vpop.permute.xlu1 %426 }
0x14e5   :  { %431 = vst.msk [vmem:[#allocation2 + $0x9] sm:$0x1] %vm284_vm3, %v427_v32 }
0x14e7   :  { %1296 = vrot.lane.b32.xlu1 %v1293_v33, %s2237_s4 }
0x14e8   :  { %v719_v0 = vpop.permute.xlu1 %718 }
0x14e9   :  { %723 = vst.msk [vmem:[#allocation2 + $0xb] sm:$0x1] %vm284_vm3, %v719_v0 }
0x14ec   :  { %v1005_v35 = vpop.permute.xlu1 %1004 }
0x14ed   :  { %1009 = vst.msk [vmem:[#allocation2 + $0xd] sm:$0x1] %vm284_vm3, %v1005_v35 }
0x1555   :  { %v1295_v36 = vpop.permute.xlu1 %1294 }
0x1556   :  { %1300 = vst.msk [vmem:[#allocation2 + $0x7] sm:$0x1] %vm284_vm3, %v1295_v36 }
0x1559   :  { %v1297_v37 = vpop.permute.xlu1 %1296 }
0x155a   :  { %1301 = vst.msk [vmem:[#allocation2 + $0xf] sm:$0x1] %vm284_vm3, %v1297_v37 }
0x155d   :  { %v1307_v38 = vld [vmem:[#allocation2] sm:$0xff] }
0x155e   :  { %2071 = vmatmul.mubr.msk.f32.vlgmr.msra.gmra.mxu1 %vm144_vm1, %v1307_v38 }
0x155f   :  { %2084 = vmatprep.mubr.msk.f32.mxu1 %vm2235_vm2, %v2234_v2  ;;  %2081 = vmatpush3.msk.msra.mxu1 %vm1497_vm5, %v2606_v8 }
0x1560   :  { %2082 = vmatprep.subr.mxu1 %v2234_v2 }
0x1561   :  { %v1308_v14 = vld [vmem:[#allocation2 + $0x8] sm:$0xff]  ;;  %2083 = vmatpush3.msra.mxu1 %v2619_v9 }
0x1562   :  { %2078 = vmatmul.mubr.msk.f32.vlgmr.msra.gmra.mxu0 %vm144_vm1, %v1308_v14  ;;  %2094 = vmatprep.subr.mxu1 %v1652_v26 }
0x1563   :  { %2091 = vmatprep.mubr.msk.f32.mxu0 %vm2235_vm2, %v2234_v2  ;;  %2088 = vmatpush3.msk.msra.mxu0 %vm1497_vm5, %v2624_v20 }
0x1564   :  { %2089 = vmatprep.subr.mxu0 %v2234_v2  ;;  %v1651_v2 = vld [vmem:[%s2715_s8 + $0x10] sm:$0xff]  ;;  %s2240_s8 = smov [#allocation5]  }
0x1565   :  { %2090 = vmatpush3.msra.mxu0 %v1311_v25  ;;  %s1856_s9 = sshll.u32 %s2240_s8, 4  ;;  %s1857_s9 = int_to_ptr.vmem [resolvable:$true] %s1856_s9 }
0x1566   :  { %2105 = vmatprep.subr.mxu0 %v1648_v53  ;;  %s2190_s17 = scalar_lea.vmem %s1857_s9, 32  ;;  %p2195_p1 = scmp.lt.s32.totalorder %s1857_s9, %s1857_s9 }
0x1567   :  { %p2191_p0 = scmp.ne.s32.totalorder %s1857_s9, %s2190_s17  ;;  %p2196_p2 = scmp.lt.s32.totalorder %s2190_s17, %s2190_s17 }
0x1569   :  { %p2197_p3 = por %p2196_p2, %p2195_p1 }
0x156b   :  { %p2198_p4 = pnand %p2197_p3, %p2191_p0 }
0x161e   :  { %v1388_v39 = vpop.f32.mrf.mxu1 }
0x161f   :  { %v1472_v40 = vsel %vm1471_vm4, %v1388_v39, -inf }
0x1620   :  { %v2072_v41 = vpop.f32.mrf.mxu1  ;;  %1473 = vmax.xlane.f32.xlu0 %v1472_v40 }
0x1622   :  { %v1467_v42 = vpop.f32.mrf.mxu0 }
0x1623   :  { %v1475_v43 = vsel %vm1471_vm4, %v1467_v42, -inf }
0x1624   :  { %1476 = vmax.xlane.f32.xlu1 %v1475_v43  ;;  %v2079_v45 = vpop.f32.mrf.mxu0 }
0x16a9   :  { %v1474_v46 = vpop.xlane.xlu0 %1473 }
0x16aa   :  { %v1478_v12 = vsub.f32 %v1388_v39, %v1474_v46 }
0x16ac   :  { %v1480_v18 = vmul.f32 1.442695, %v1478_v12 }
0x16ad   :  { %v1477_v47 = vpop.xlane.xlu1 %1476 }
0x16ae   :  { %2174 = vpow2.f32 %v1480_v18  ;;  %v1479_v55 = vsub.f32 %v1467_v42, %v1477_v47 }
0x16b0   :  { %v1482_v48 = vmul.f32 1.442695, %v1479_v55 }
0x16b2   :  { %2176 = vpow2.f32 %v1482_v48 }
0x16bb   :  { %v2175_v44 = vpop.eup %2174 }
0x16bc   :  { %v1484_v50 = vsel %vm1471_vm4, %v2175_v44, 0.0 }
0x16bd   :  { %1485 = vadd.xlane.f32.xlu0 %v1484_v50 }
0x16bf   :  { %v2177_v51 = vpop.eup %2176 }
0x16c0   :  { %v1487_v52 = vsel %vm1471_vm4, %v2177_v51, 0.0 }
0x16c1   :  { %1488 = vadd.xlane.f32.xlu0 %v1487_v52 }
0x1746   :  { %v1486_v54 = vpop.xlane.xlu0 %1485 }
0x1747   :  { %2178 = vrcp.f32 %v1486_v54 }
0x174a   :  { %v1489_v56 = vpop.xlane.xlu0 %1488 }
0x174b   :  { %2180 = vrcp.f32 %v1489_v56 }
0x1754   :  { %v2179_v57 = vpop.eup %2178 }
0x1755   :  { %v1492_v58 = vmul.f32 %v2179_v57, %v2175_v44 }
0x1757   :  { %2085 = vmatmul.mubr.msk.f32.vlgmr.msra.gmra.mxu1 %vm1471_vm4, %v1492_v58 }
0x1758   :  { %v2181_v59 = vpop.eup %2180  ;;  %2095 = vmatpush3.msra.mxu1 %v1652_v26 }
0x1759   :  { %v1493_v60 = vmul.f32 %v2181_v59, %v2177_v51  ;;  %2096 = vmatprep.subr.mxu1 %v1651_v2 }
0x175a   :  { %2097 = vmatpush3.msra.mxu1 %v1651_v2 }
0x175b   :  { %2092 = vmatmul.mubr.msk.f32.vlgmr.msra.gmra.mxu0 %vm1471_vm4, %v1493_v60  ;;  %2098 = vmatprep.subr.mxu1 %v1650_v4 }
0x175c   :  { %2106 = vmatpush3.msra.mxu0 %v1648_v53  ;;  %2113 = vmatprep.mubr.msk.f32.mxu0 %vm144_vm1, %v1307_v38 }
0x175d   :  { %2107 = vmatprep.subr.mxu0 %v1647_v61  ;;  %2099 = vmatpush3.msra.mxu1 %v1650_v4 }
0x175e   :  { %2108 = vmatpush3.msra.mxu0 %v1647_v61  ;;  %2100 = vmatprep.subr.mxu1 %v1649_v5 }
0x175f   :  { %2109 = vmatprep.subr.mxu0 %v1646_v62  ;;  %2101 = vmatpush3.msra.mxu1 %v1649_v5 }
0x1760   :  { %2110 = vmatpush3.msra.mxu0 %v1646_v62 }
0x1761   :  { %2111 = vmatprep.subr.mxu0 %v1645_v63 }
0x1762   :  { %2112 = vmatpush3.msra.mxu0 %v1645_v63 }
0x1763   :  { %2114 = vmatmul.mubr.msk.f32.vlgmr.msra.gmra.mxu0 %vm144_vm1, %v1308_v14 }
0x1817   :  { %v1566_v13 = vpop.f32.mrf.mxu1 }
0x1818   :  { %2102 = vmatprep.mubr.msk.f32.mxu1 %vm144_vm1, %v1566_v13 }
0x1819   :  { %v2086_v7 = vpop.f32.mrf.mxu1 }
0x181b   :  { %v1641_v10 = vpop.f32.mrf.mxu0 }
0x181c   :  { %2103 = vmatmul.mubr.msk.f32.vlgmr.msra.gmra.mxu1 %vm144_vm1, %v1641_v10 }
0x181d   :  { %v2093_v3 = vpop.f32.mrf.mxu0 }
0x1823   :  { %v2115_v11 = vpop.f32.mrf.mxu0 }
0x1825   :  { %v1800_v21 = vpop.f32.mrf.mxu0 }
0x18dc   :  { %v2104_v6 = vpop.f32.mrf.mxu1 }
0x18dd   :  { %v1806_v34 = vadd.f32 %v2115_v11, %v2104_v6 }
0x18de   :  { %v1725_v16 = vpop.f32.mrf.mxu1 }
0x18df   :  { %v1801_v8 = vadd.f32 %v1800_v21, %v1725_v16  ;;  %v1817_v19 = vadd.f32 %v1902_v15, %v1806_v34 }
0x18e1   :  { %1820 = vmax.xlane.f32.xlu0 %v1817_v19  ;;  %v1816_v49 = vadd.f32 %v1902_v15, %v1801_v8 }
0x18e3   :  { %1818 = vmax.xlane.f32.xlu1 %v1816_v49 }
0x196a   :  { %v1821_v9 = vpop.xlane.xlu0 %1820 }
0x196b   :  { %v1823_v20 = vsub.f32 %v1817_v19, %v1821_v9 }
0x196c   :  { %v1819_v1 = vpop.xlane.xlu1 %1818 }
0x196d   :  { %v1826_v22 = vmul.f32 1.442695, %v1823_v20  ;;  %v1822_v23 = vsub.f32 %v1816_v49, %v1819_v1 }
0x196f   :  { %2182 = vpow2.f32 %v1826_v22  ;;  %v1824_v24 = vmul.f32 1.442695, %v1822_v23 }
0x1971   :  { %2184 = vpow2.f32 %v1824_v24 }
0x197c   :  { %v2183_v25 = vpop.eup %2182 }
0x197d   :  { %1830 = vadd.xlane.f32.xlu0 %v2183_v25 }
0x197e   :  { %v2185_v27 = vpop.eup %2184 }
0x197f   :  { %1828 = vadd.xlane.f32.xlu1 %v2185_v27 }
0x1990   :  { %1302 = vrot.lane.b32.xlu1 %v2608_v17, %s2237_s4 }
0x1a06   :  { %v1831_v28 = vpop.xlane.xlu0 %1830 }
0x1a07   :  { %2186 = vrcp.f32 %v1831_v28 }
0x1a08   :  { %v1829_v29 = vpop.xlane.xlu1 %1828 }
0x1a09   :  { %2188 = vrcp.f32 %v1829_v29 }
0x1a0c   :  { %v1303_v30 = vpop.permute.xlu1 %1302 }
0x1a0d   :  { %1306 = vst.msk [vmem:[#allocation5 - $0x6] sm:$0xc0] %vm1305_vm6, %v1303_v30 }
0x1a0e   :  { %2201 = shalt.err (!%p2198_p4)
}
0x1a0f   :  { %1859 = dma.vmem_to_hbm [thread:$0]  %s1857_s9, 32, %s2718_s11, [#allocation6]  }
0x1a10   :  { %s2241_s4 = smov [#allocation3]  }
0x1a11   :  { %s1843_s20 = sshll.u32 %s2241_s4, 4  ;;  %s1844_s20 = int_to_ptr.vmem [resolvable:$true] %s1843_s20 }
0x1a12   :  { %s2210_s21 = scalar_lea.vmem %s1844_s20, 256  ;;  %p2215_p6 = scmp.lt.s32.totalorder %s1844_s20, %s1844_s20 }
0x1a13   :  { %p2211_p5 = scmp.ne.s32.totalorder %s1844_s20, %s2210_s21  ;;  %p2216_p7 = scmp.lt.s32.totalorder %s2210_s21, %s2210_s21 }
0x1a14   :  { %v2187_v17 = vpop.eup %2186 }
0x1a15   :  { %v1835_v31 = vmul.f32 %v2187_v17, %v2183_v25  ;;  %p2217_p8 = por %p2216_p7, %p2215_p6 }
0x1a16   :  { %v2189_v32 = vpop.eup %2188 }
0x1a17   :  { %v1834_v33 = vmul.f32 %v2189_v32, %v2185_v27  ;;  %1837 = vst [vmem:[#allocation3 + $0x8] sm:$0xff] %v1835_v31  ;;  %p2218_p9 = pnand %p2217_p8, %p2211_p5 }
0x1a19   :  { %1836 = vst [vmem:[#allocation3] sm:$0xff] %v1834_v33 }
0x1a1a   :  { %2221 = shalt.err (!%p2218_p9)
}
0x1a1b   :  { %s2242_s22 = smov 128   ;;  %s2243_s23 = smov 8  }
0x1a1c   :  { %1849 = dma.vmem_to_hbm [thread:$0]  %s1844_s20, 256, %s2717_s10, [#allocation4], %s2242_s22, %s2242_s22, %s2243_s23  }
0x1a1d   :  { %2230 = dma.done.wait [#allocation4], 256  }
0x1a1e   :  { %2231 = vsyncadd [#allocation4], 4294967040 }
0x1a1f   :  { %2232 = dma.done.wait [#allocation6], 32  }
0x1a20   :  { %2233 = vsyncadd [#allocation6], 4294967264 }
0x1a21   :  { %1866 = vsyncpa [#allocation4], 1 }
0x1a22   :  { %1867 = vsyncpa [#allocation6], 1 }

</bundles_post_ra>
